<compile_context>
chip_gen: v7x
topology: tpu7x:2x2x1
jax: 0.10.0
libtpu: 0.0.40
codegen_flags: <defaults>
</compile_context>

<pallas_src>
import functools

import jax
import jax.numpy as jnp
from jax.experimental import pallas as pl
from jax.experimental.pallas import tpu as pltpu


# ---------------------------------------------------------------------------
# Fused encoder kernel: all LSTM layers, one time-chunk per grid step.
# ---------------------------------------------------------------------------
def _encoder_lstm_kernel(*refs, n_layers, hidden_size, batch, chunk_steps,
                         unroll):
    """Ref layout (positional):
      refs[0]            : x        (Tc*Bp, E)  bf16, time-major rows (row = t*Bp + b)
      refs[1 : 1+3L]     : per layer [w_ih (F,4H) bf16, w_hh (H,4H) bf16, bias (1,4H) f32]
      refs[1+3L : 4+3L]  : out (Tc*Bp, H) f32, hN (L,Bp,H) f32, cN (L,Bp,H) f32
      refs[4+3L : ]      : gx scratch (Tc*Bp, 4H) f32, act scratch (Tc*Bp, H) bf16

    Gate column order is [i, f, o, g] (pre-permuted in the wrapper).
    hN/cN output blocks keep the same block index across the (arbitrary) chunk
    axis, so they stay VMEM-resident and double as the recurrent carries.
    """
    H = hidden_size
    Bp = batch
    x_ref = refs[0]
    w_refs = refs[1:1 + 3 * n_layers]
    out_ref, hN_ref, cN_ref = refs[1 + 3 * n_layers:4 + 3 * n_layers]
    gx_ref, act_ref = refs[4 + 3 * n_layers:]

    chunk = pl.program_id(0)

    @pl.when(chunk == 0)
    def _():
        hN_ref[...] = jnp.zeros_like(hN_ref)
        cN_ref[...] = jnp.zeros_like(cN_ref)

    for layer in range(n_layers):
        w_ih = w_refs[3 * layer][...]        # (F, 4H)  bf16
        w_hh = w_refs[3 * layer + 1][...]    # (H, 4H)  bf16
        bias = w_refs[3 * layer + 2][...]    # (1, 4H)  f32
        src_ref = x_ref if layer == 0 else act_ref
        dst_ref = out_ref if layer == n_layers - 1 else act_ref

        # Hoisted input projection: ONE (Tc*Bp, F) @ (F, 4H) MXU matmul per
        # chunk; only h_prev @ W_hh remains on the serial critical path.
        # src_ref is already bf16 (boundary / inter-layer scratch), no cast.
        gx_ref[...] = (
            jnp.dot(src_ref[...], w_ih, preferred_element_type=jnp.float32)
            + bias)

        def step(t, carry):
            h_prev, c_prev = carry                                  # (Bp, H) f32
            row = t * Bp
            gates = gx_ref[pl.ds(row, Bp), :] + jnp.dot(
                h_prev.astype(w_hh.dtype), w_hh,
                preferred_element_type=jnp.float32)                 # (Bp, 4H) f32
            # Gate order [i, f, o | g]: one sigmoid over the contiguous (Bp,3H)
            # slab + one tanh instead of 4 separate EUP launches per step.
            ifo = jax.nn.sigmoid(gates[:, :3 * H])
            g_g = jnp.tanh(gates[:, 3 * H:])
            i_g = ifo[:, 0 * H:1 * H]
            f_g = ifo[:, 1 * H:2 * H]
            o_g = ifo[:, 2 * H:3 * H]
            c_new = f_g * c_prev + i_g * g_g
            h_new = o_g * jnp.tanh(c_new)
            dst_ref[pl.ds(row, Bp), :] = h_new.astype(dst_ref.dtype)
            return (h_new, c_new)

        h_fin, c_fin = jax.lax.fori_loop(
            0, chunk_steps, step, (hN_ref[layer], cN_ref[layer]),
            unroll=unroll)
        hN_ref[layer] = h_fin
        cN_ref[layer] = c_fin


# ---------------------------------------------------------------------------
# VMEM budgeting (generation aware) and time-chunk selection.
# ---------------------------------------------------------------------------
def _vmem_capacity_bytes():
    """Physical VMEM per TensorCore; falls back to the v7x minimum (64 MiB)."""
    try:
        return int(pltpu.get_tpu_info().vmem_capacity_bytes)
    except Exception:
        return 64 * 1024 * 1024


def _chunk_footprint_bytes(tc, Bp, E, H, n_layers):
    rows = tc * Bp
    b = rows * E * 2 * 2                    # x block, bf16, double-buffered
    b += rows * H * 4 * 2                   # out block, f32, double-buffered
    b += rows * 4 * H * 4                   # gx scratch, f32
    b += rows * H * 2                       # inter-layer act scratch, bf16
    for layer in range(n_layers):
        F = E if layer == 0 else H
        b += (F + H) * 4 * H * 2            # weights, bf16, single VMEM copy
        b += 4 * H * 4                      # fused bias, f32
    b += 2 * n_layers * Bp * H * 4 * 2      # hN/cN output blocks
    return b


def _pick_time_chunk(T, Bp, E, H, n_layers, budget_bytes):
    """Largest divisor of T whose per-chunk VMEM footprint fits the budget."""
    for tc in sorted((d for d in range(1, T + 1) if T % d == 0), reverse=True):
        if _chunk_footprint_bytes(tc, Bp, E, H, n_layers) <= budget_bytes:
            return tc
    return 1


def _reorder_gate_rows(w):
    """PyTorch gate order [i, f, g, o] along axis 0 -> [i, f, o, g]."""
    H = w.shape[0] // 4
    return jnp.concatenate(
        [w[0:H], w[H:2 * H], w[3 * H:4 * H], w[2 * H:3 * H]], axis=0)


# ---------------------------------------------------------------------------
# Wrapper: embedding gather + fused LSTM stack.
# ---------------------------------------------------------------------------
def encoder_lstm_forward(params, src, *, compute_dtype=jnp.bfloat16):
    """src: (B, T) int32 token ids.  Eval-mode forward (dropout = identity)."""
    B, T = src.shape
    n_layers = len(params["lstm"])
    H = params["lstm"][0]["w_hh"].shape[1]

    # Embedding gather stays as XLA glue (data-dependent gather; row 1 of the
    # table is zero, matching padding_idx=1).
    embedded = jnp.take(params["embedding"], src, axis=0)           # (B, T, E)
    E = embedded.shape[-1]
    # TODO(synk): nn.Dropout is stochastic; eval-mode identity is used here.

    # Pad the batch to full f32 sublanes (8) so per-step stores and the
    # (B,H)@(H,4H) recurrence matmul are unmasked; strip padding afterwards.
    Bp = max(8, ((B + 7) // 8) * 8)
    x = jnp.transpose(embedded, (1, 0, 2))                          # (T, B, E)
    if Bp != B:
        x = jnp.pad(x, ((0, 0), (0, Bp - B), (0, 0)))
    x = x.reshape(T * Bp, E).astype(compute_dtype)                  # bf16 boundary

    # Weight prep: gate order [i, f, o, g], pre-transposed (lane dim = 4H),
    # MXU operands in bf16, fused bias stays f32.
    weight_args = []
    for lp in params["lstm"]:
        w_ih_t = _reorder_gate_rows(jnp.asarray(lp["w_ih"], jnp.float32)).T
        w_hh_t = _reorder_gate_rows(jnp.asarray(lp["w_hh"], jnp.float32)).T
        bias = _reorder_gate_rows(
            jnp.asarray(lp["b_ih"] + lp["b_hh"], jnp.float32)).reshape(1, 4 * H)
        weight_args += [w_ih_t.astype(compute_dtype),
                        w_hh_t.astype(compute_dtype),
                        bias]

    # Generation-aware VMEM budget (v7x: 64 MiB, v5e/v6e: 128 MiB physical).
    cap = _vmem_capacity_bytes()
    budget = (cap * 3) // 4
    tc = _pick_time_chunk(T, Bp, E, H, n_layers, budget)
    n_chunks = T // tc
    rows = tc * Bp
    footprint = _chunk_footprint_bytes(tc, Bp, E, H, n_layers)
    vmem_limit = int(min(cap, max(32 * 1024 * 1024,
                                  footprint + 8 * 1024 * 1024)))

    # Bounded unroll of the recurrence: keep LLO visibility without spilling
    # the 64-vreg file (~64K live f32 values) once B*4H gets large.
    live_f32_per_step = Bp * 4 * H + 4 * Bp * H
    unroll = max(1, min(8, tc, (64 * 1024) // max(live_f32_per_step, 1)))

    # Grid-invariant weights/biases: whole-array VMEM residency (single copy).
    weight_specs = [pl.BlockSpec(memory_space=pltpu.MemorySpace.VMEM)
                    for _ in range(3 * n_layers)]

    kernel = functools.partial(
        _encoder_lstm_kernel, n_layers=n_layers, hidden_size=H, batch=Bp,
        chunk_steps=tc, unroll=unroll)

    outs, h_n, c_n = pl.pallas_call(
        kernel,
        out_shape=(
            jax.ShapeDtypeStruct((T * Bp, H), jnp.float32),
            jax.ShapeDtypeStruct((n_layers, Bp, H), jnp.float32),
            jax.ShapeDtypeStruct((n_layers, Bp, H), jnp.float32),
        ),
        grid_spec=pltpu.PrefetchScalarGridSpec(
            num_scalar_prefetch=0,
            grid=(n_chunks,),
            in_specs=[pl.BlockSpec((rows, E), lambda c: (c, 0))] + weight_specs,
            out_specs=(
                pl.BlockSpec((rows, H), lambda c: (c, 0)),
                pl.BlockSpec((n_layers, Bp, H), lambda c: (0, 0, 0)),  # h carry
                pl.BlockSpec((n_layers, Bp, H), lambda c: (0, 0, 0)),  # c carry
            ),
            scratch_shapes=[
                pltpu.VMEM((rows, 4 * H), jnp.float32),    # hoisted gates_x
                pltpu.VMEM((rows, H), compute_dtype),      # inter-layer activation
            ],
        ),
        compiler_params=pltpu.CompilerParams(
            # Time-chunk axis is a recurrence (hN/cN carry state across it).
            dimension_semantics=("arbitrary",),
            vmem_limit_bytes=vmem_limit,
        ),
    )(x, *weight_args)

    encoder_outputs = jnp.transpose(
        outs.reshape(T, Bp, H)[:, :B, :], (1, 0, 2))                # (B, T, H)
    return encoder_outputs, (h_n[:, :B, :], c_n[:, :B, :])


# ---------------------------------------------------------------------------
# Parameter init and pure-JAX reference (same bf16 rounding as the kernel).
# ---------------------------------------------------------------------------
def init_encoder_params(key, vocab_size, embed_size, hidden_size, n_layers):
    """Deterministic synthetic parameters matching nn.Embedding + nn.LSTM shapes."""
    params = {}
    key, k_emb = jax.random.split(key)
    emb = jax.random.normal(k_emb, (vocab_size, embed_size), jnp.float32)
    emb = emb.at[1].set(0.0)  # padding_idx=1 row is zero
    params["embedding"] = emb

    scale = 1.0 / jnp.sqrt(jnp.float32(hidden_size))
    layers = []
    for layer in range(n_layers):
        in_size = embed_size if layer == 0 else hidden_size
        key, k1, k2, k3, k4 = jax.random.split(key, 5)
        layers.append(dict(
            w_ih=jax.random.uniform(k1, (4 * hidden_size, in_size),
                                    jnp.float32, -scale, scale),
            w_hh=jax.random.uniform(k2, (4 * hidden_size, hidden_size),
                                    jnp.float32, -scale, scale),
            b_ih=jax.random.uniform(k3, (4 * hidden_size,),
                                    jnp.float32, -scale, scale),
            b_hh=jax.random.uniform(k4, (4 * hidden_size,),
                                    jnp.float32, -scale, scale),
        ))
    params["lstm"] = layers
    return params


def _reference_forward(params, src, compute_dtype):
    """Pure-JAX (XLA) reference with the same bf16 weight/activation rounding."""
    def cast(v):
        return v.astype(compute_dtype).astype(jnp.float32)

    B, T = src.shape
    x = jnp.transpose(jnp.take(params["embedding"], src, axis=0), (1, 0, 2))
    h_fin, c_fin = [], []
    for lp in params["lstm"]:
        H = lp["w_hh"].shape[1]
        wi = cast(lp["w_ih"].T)                  # (F, 4H)
        wh = cast(lp["w_hh"].T)                  # (H, 4H)
        b = (lp["b_ih"] + lp["b_hh"]).astype(jnp.float32)

        def step(carry, x_t):
            h, c = carry
            gates = cast(x_t) @ wi + cast(h) @ wh + b
            i = jax.nn.sigmoid(gates[:, 0 * H:1 * H])
            f = jax.nn.sigmoid(gates[:, 1 * H:2 * H])
            g = jnp.tanh(gates[:, 2 * H:3 * H])
            o = jax.nn.sigmoid(gates[:, 3 * H:4 * H])
            c = f * c + i * g
            h = o * jnp.tanh(c)
            return (h, c), h

        init = (jnp.zeros((B, H), jnp.float32), jnp.zeros((B, H), jnp.float32))
        (h, c), x = jax.lax.scan(step, init, x)
        h_fin.append(h)
        c_fin.append(c)
    return (jnp.transpose(x, (1, 0, 2)),
            (jnp.stack(h_fin, axis=0), jnp.stack(c_fin, axis=0)))


if __name__ == "__main__":
    VOCAB, EMBED, HIDDEN, N_LAYERS = 50, 32, 32, 2
    BATCH, SEQ = 2, 8

    key = jax.random.PRNGKey(0)
    key, k_src = jax.random.split(key)
    params = init_encoder_params(key, VOCAB, EMBED, HIDDEN, N_LAYERS)
    src = jax.random.randint(k_src, (BATCH, SEQ), 0, VOCAB, dtype=jnp.int32)

    fwd = jax.jit(encoder_lstm_forward)
    outputs, (h_n, c_n) = fwd(params, src)
    jax.block_until_ready((outputs, h_n, c_n))

    assert outputs.shape == (BATCH, SEQ, HIDDEN)
    assert h_n.shape == (N_LAYERS, BATCH, HIDDEN)
    assert c_n.shape == (N_LAYERS, BATCH, HIDDEN)

    # Numerical sanity check against a pure-JAX reference (same bf16 rounding).
    ref_out, (ref_h, ref_c) = _reference_forward(params, src, jnp.bfloat16)
    assert jnp.allclose(outputs, ref_out, atol=2e-3, rtol=2e-3)
    assert jnp.allclose(h_n, ref_h, atol=2e-3, rtol=2e-3)
    assert jnp.allclose(c_n, ref_c, atol=2e-3, rtol=2e-3)

    print("KERNEL_OK")
</pallas_src>

<mosaic_0001>
module attributes {stable_mosaic.version = 11 : i64} {
  func.func @_encoder_lstm_kernel(%arg0: i32, %arg1: memref<64x32xbf16, #tpu.memory_space<vmem>>, %arg2: memref<32x128xbf16, #tpu.memory_space<vmem>>, %arg3: memref<32x128xbf16, #tpu.memory_space<vmem>>, %arg4: memref<1x128xf32, #tpu.memory_space<vmem>>, %arg5: memref<32x128xbf16, #tpu.memory_space<vmem>>, %arg6: memref<32x128xbf16, #tpu.memory_space<vmem>>, %arg7: memref<1x128xf32, #tpu.memory_space<vmem>>, %arg8: memref<64x32xf32, #tpu.memory_space<vmem>>, %arg9: memref<2x8x32xf32, #tpu.memory_space<vmem>>, %arg10: memref<2x8x32xf32, #tpu.memory_space<vmem>>, %arg11: memref<64x128xf32, #tpu.memory_space<vmem>>, %arg12: memref<64x32xbf16, #tpu.memory_space<vmem>>) attributes {dimension_semantics = [#tpu.dimension_semantics<arbitrary>], iteration_bounds = array<i64: 1>, scalar_prefetch = 0 : i64, scratch_operands = 2 : i64, tpu.core_type = #tpu.core_type<tc>, window_params = [{transform_indices = @transform_0, window_bounds = array<i64: 64, 32>}, {pipeline_mode = #tpu.pipeline_mode<synchronous>, transform_indices = @transform_1, window_bounds = array<i64: 32, 128>}, {pipeline_mode = #tpu.pipeline_mode<synchronous>, transform_indices = @transform_2, window_bounds = array<i64: 32, 128>}, {pipeline_mode = #tpu.pipeline_mode<synchronous>, transform_indices = @transform_3, window_bounds = array<i64: 1, 128>}, {pipeline_mode = #tpu.pipeline_mode<synchronous>, transform_indices = @transform_4, window_bounds = array<i64: 32, 128>}, {pipeline_mode = #tpu.pipeline_mode<synchronous>, transform_indices = @transform_5, window_bounds = array<i64: 32, 128>}, {pipeline_mode = #tpu.pipeline_mode<synchronous>, transform_indices = @transform_6, window_bounds = array<i64: 1, 128>}, {transform_indices = @transform_7, window_bounds = array<i64: 64, 32>}, {pipeline_mode = #tpu.pipeline_mode<synchronous>, transform_indices = @transform_8, window_bounds = array<i64: 2, 8, 32>}, {pipeline_mode = #tpu.pipeline_mode<synchronous>, transform_indices = @transform_9, window_bounds = array<i64: 2, 8, 32>}]} {
    %c0_i32 = arith.constant 0 : i32
    %0 = arith.cmpi eq, %arg0, %c0_i32 : i32
    %1 = arith.extui %0 : i1 to i32
    %c0_i32_0 = arith.constant 0 : i32
    %2 = arith.cmpi ne, %1, %c0_i32_0 : i32
    scf.if %2 {
      %cst_134 = arith.constant 0.000000e+00 : f32
      %431 = vector.broadcast %cst_134 : f32 to vector<2x8x32xf32>
      %c0_135 = arith.constant 0 : index
      %c0_136 = arith.constant 0 : index
      %c0_137 = arith.constant 0 : index
      %432 = vector.load %arg9[%c0_135, %c0_136, %c0_137] : memref<2x8x32xf32, #tpu.memory_space<vmem>>, vector<2x8x32xf32>
      tpu.vector_store %arg9[%c0_135, %c0_136, %c0_137], %431 {strides = array<i32>} : memref<2x8x32xf32, #tpu.memory_space<vmem>>, vector<2x8x32xf32>,
      %cst_138 = arith.constant 0.000000e+00 : f32
      %433 = vector.broadcast %cst_138 : f32 to vector<2x8x32xf32>
      %c0_139 = arith.constant 0 : index
      %c0_140 = arith.constant 0 : index
      %c0_141 = arith.constant 0 : index
      %434 = vector.load %arg10[%c0_139, %c0_140, %c0_141] : memref<2x8x32xf32, #tpu.memory_space<vmem>>, vector<2x8x32xf32>
      tpu.vector_store %arg10[%c0_139, %c0_140, %c0_141], %433 {strides = array<i32>} : memref<2x8x32xf32, #tpu.memory_space<vmem>>, vector<2x8x32xf32>,
    } else {
    }
    %c0 = arith.constant 0 : index
    %c0_1 = arith.constant 0 : index
    %3 = vector.load %arg2[%c0, %c0_1] : memref<32x128xbf16, #tpu.memory_space<vmem>>, vector<32x128xbf16>
    %c0_2 = arith.constant 0 : index
    %c0_3 = arith.constant 0 : index
    %4 = vector.load %arg3[%c0_2, %c0_3] : memref<32x128xbf16, #tpu.memory_space<vmem>>, vector<32x128xbf16>
    %c0_4 = arith.constant 0 : index
    %c0_5 = arith.constant 0 : index
    %5 = vector.load %arg4[%c0_4, %c0_5] : memref<1x128xf32, #tpu.memory_space<vmem>>, vector<1x128xf32>
    %c0_6 = arith.constant 0 : index
    %c0_7 = arith.constant 0 : index
    %6 = vector.load %arg1[%c0_6, %c0_7] : memref<64x32xbf16, #tpu.memory_space<vmem>>, vector<64x32xbf16>
    %cst = arith.constant dense<0.000000e+00> : vector<64x128xf32>
    %7 = tpu.matmul %6, %3, %cst {dimension_numbers = #tpu.dot_dimension_numbers<[1], [0], [0], [1], [0, 0, 1, 1], [], []>} : vector<64x32xbf16>, vector<32x128xbf16>, vector<64x128xf32> -> vector<64x128xf32>
    %8 = vector.broadcast %5 : vector<1x128xf32> to vector<64x128xf32>
    %9 = arith.addf %7, %8 : vector<64x128xf32>
    %c0_8 = arith.constant 0 : index
    %c0_9 = arith.constant 0 : index
    %10 = vector.load %arg11[%c0_8, %c0_9] : memref<64x128xf32, #tpu.memory_space<vmem>>, vector<64x128xf32>
    tpu.vector_store %arg11[%c0_8, %c0_9], %9 {strides = array<i32>} : memref<64x128xf32, #tpu.memory_space<vmem>>, vector<64x128xf32>,
    %c0_10 = arith.constant 0 : index
    %c0_11 = arith.constant 0 : index
    %c0_12 = arith.constant 0 : index
    %11 = vector.load %arg9[%c0_10, %c0_11, %c0_12] : memref<2x8x32xf32, #tpu.memory_space<vmem>>, vector<1x8x32xf32>
    %12 = vector.shape_cast %11 : vector<1x8x32xf32> to vector<8x32xf32>
    %c0_13 = arith.constant 0 : index
    %c0_14 = arith.constant 0 : index
    %c0_15 = arith.constant 0 : index
    %13 = vector.load %arg10[%c0_13, %c0_14, %c0_15] : memref<2x8x32xf32, #tpu.memory_space<vmem>>, vector<1x8x32xf32>
    %14 = vector.shape_cast %13 : vector<1x8x32xf32> to vector<8x32xf32>
    %c0_i32_16 = arith.constant 0 : i32
    %c8_i32 = arith.constant 8 : i32
    %15 = arith.muli %c0_i32_16, %c8_i32 : i32
    %16 = arith.index_cast %15 : i32 to index
    %c0_17 = arith.constant 0 : index
    %17 = vector.load %arg11[%16, %c0_17] : memref<64x128xf32, #tpu.memory_space<vmem>>, vector<8x128xf32>
    %18 = arith.truncf %12 : vector<8x32xf32> to vector<8x32xbf16>
    %cst_18 = arith.constant dense<0.000000e+00> : vector<8x128xf32>
    %19 = tpu.matmul %18, %4, %cst_18 {dimension_numbers = #tpu.dot_dimension_numbers<[1], [0], [0], [1], [0, 0, 1, 1], [], []>} : vector<8x32xbf16>, vector<32x128xbf16>, vector<8x128xf32> -> vector<8x128xf32>
    %20 = arith.addf %17, %19 : vector<8x128xf32>
    %21 = vector.extract_strided_slice %20 {offsets = [0, 0], sizes = [8, 96], strides = [1, 1]} : vector<8x128xf32> to vector<8x96xf32>
    %22 = arith.negf %21 : vector<8x96xf32>
    %23 = math.exp %22 : vector<8x96xf32>
    %cst_19 = arith.constant 1.000000e+00 : f32
    %24 = vector.broadcast %cst_19 : f32 to vector<8x96xf32>
    %25 = arith.addf %24, %23 : vector<8x96xf32>
    %26 = arith.divf %24, %25 : vector<8x96xf32>
    %27 = vector.extract_strided_slice %20 {offsets = [0, 96], sizes = [8, 32], strides = [1, 1]} : vector<8x128xf32> to vector<8x32xf32>
    %28 = math.tanh %27 : vector<8x32xf32>
    %29 = vector.extract_strided_slice %26 {offsets = [0, 0], sizes = [8, 32], strides = [1, 1]} : vector<8x96xf32> to vector<8x32xf32>
    %30 = vector.extract_strided_slice %26 {offsets = [0, 32], sizes = [8, 32], strides = [1, 1]} : vector<8x96xf32> to vector<8x32xf32>
    %31 = vector.extract_strided_slice %26 {offsets = [0, 64], sizes = [8, 32], strides = [1, 1]} : vector<8x96xf32> to vector<8x32xf32>
    %32 = arith.mulf %30, %14 : vector<8x32xf32>
    %33 = arith.mulf %29, %28 : vector<8x32xf32>
    %34 = arith.addf %32, %33 : vector<8x32xf32>
    %35 = math.tanh %34 : vector<8x32xf32>
    %36 = arith.mulf %31, %35 : vector<8x32xf32>
    %37 = arith.truncf %36 : vector<8x32xf32> to vector<8x32xbf16>
    %38 = arith.index_cast %15 : i32 to index
    %c0_20 = arith.constant 0 : index
    %39 = vector.load %arg12[%38, %c0_20] : memref<64x32xbf16, #tpu.memory_space<vmem>>, vector<8x32xbf16>
    tpu.vector_store %arg12[%38, %c0_20], %37 {strides = array<i32>} : memref<64x32xbf16, #tpu.memory_space<vmem>>, vector<8x32xbf16>,
    %c1_i32 = arith.constant 1 : i32
    %c8_i32_21 = arith.constant 8 : i32
    %40 = arith.muli %c1_i32, %c8_i32_21 : i32
    %41 = arith.index_cast %40 : i32 to index
    %c0_22 = arith.constant 0 : index
    %42 = vector.load %arg11[%41, %c0_22] : memref<64x128xf32, #tpu.memory_space<vmem>>, vector<8x128xf32>
    %43 = arith.truncf %36 : vector<8x32xf32> to vector<8x32xbf16>
    %cst_23 = arith.constant dense<0.000000e+00> : vector<8x128xf32>
    %44 = tpu.matmul %43, %4, %cst_23 {dimension_numbers = #tpu.dot_dimension_numbers<[1], [0], [0], [1], [0, 0, 1, 1], [], []>} : vector<8x32xbf16>, vector<32x128xbf16>, vector<8x128xf32> -> vector<8x128xf32>
    %45 = arith.addf %42, %44 : vector<8x128xf32>
    %46 = vector.extract_strided_slice %45 {offsets = [0, 0], sizes = [8, 96], strides = [1, 1]} : vector<8x128xf32> to vector<8x96xf32>
    %47 = arith.negf %46 : vector<8x96xf32>
    %48 = math.exp %47 : vector<8x96xf32>
    %cst_24 = arith.constant 1.000000e+00 : f32
    %49 = vector.broadcast %cst_24 : f32 to vector<8x96xf32>
    %50 = arith.addf %49, %48 : vector<8x96xf32>
    %51 = arith.divf %49, %50 : vector<8x96xf32>
    %52 = vector.extract_strided_slice %45 {offsets = [0, 96], sizes = [8, 32], strides = [1, 1]} : vector<8x128xf32> to vector<8x32xf32>
    %53 = math.tanh %52 : vector<8x32xf32>
    %54 = vector.extract_strided_slice %51 {offsets = [0, 0], sizes = [8, 32], strides = [1, 1]} : vector<8x96xf32> to vector<8x32xf32>
    %55 = vector.extract_strided_slice %51 {offsets = [0, 32], sizes = [8, 32], strides = [1, 1]} : vector<8x96xf32> to vector<8x32xf32>
    %56 = vector.extract_strided_slice %51 {offsets = [0, 64], sizes = [8, 32], strides = [1, 1]} : vector<8x96xf32> to vector<8x32xf32>
    %57 = arith.mulf %55, %34 : vector<8x32xf32>
    %58 = arith.mulf %54, %53 : vector<8x32xf32>
    %59 = arith.addf %57, %58 : vector<8x32xf32>
    %60 = math.tanh %59 : vector<8x32xf32>
    %61 = arith.mulf %56, %60 : vector<8x32xf32>
    %62 = arith.truncf %61 : vector<8x32xf32> to vector<8x32xbf16>
    %63 = arith.index_cast %40 : i32 to index
    %c0_25 = arith.constant 0 : index
    %64 = vector.load %arg12[%63, %c0_25] : memref<64x32xbf16, #tpu.memory_space<vmem>>, vector<8x32xbf16>
    tpu.vector_store %arg12[%63, %c0_25], %62 {strides = array<i32>} : memref<64x32xbf16, #tpu.memory_space<vmem>>, vector<8x32xbf16>,
    %c2_i32 = arith.constant 2 : i32
    %c8_i32_26 = arith.constant 8 : i32
    %65 = arith.muli %c2_i32, %c8_i32_26 : i32
    %66 = arith.index_cast %65 : i32 to index
    %c0_27 = arith.constant 0 : index
    %67 = vector.load %arg11[%66, %c0_27] : memref<64x128xf32, #tpu.memory_space<vmem>>, vector<8x128xf32>
    %68 = arith.truncf %61 : vector<8x32xf32> to vector<8x32xbf16>
    %cst_28 = arith.constant dense<0.000000e+00> : vector<8x128xf32>
    %69 = tpu.matmul %68, %4, %cst_28 {dimension_numbers = #tpu.dot_dimension_numbers<[1], [0], [0], [1], [0, 0, 1, 1], [], []>} : vector<8x32xbf16>, vector<32x128xbf16>, vector<8x128xf32> -> vector<8x128xf32>
    %70 = arith.addf %67, %69 : vector<8x128xf32>
    %71 = vector.extract_strided_slice %70 {offsets = [0, 0], sizes = [8, 96], strides = [1, 1]} : vector<8x128xf32> to vector<8x96xf32>
    %72 = arith.negf %71 : vector<8x96xf32>
    %73 = math.exp %72 : vector<8x96xf32>
    %cst_29 = arith.constant 1.000000e+00 : f32
    %74 = vector.broadcast %cst_29 : f32 to vector<8x96xf32>
    %75 = arith.addf %74, %73 : vector<8x96xf32>
    %76 = arith.divf %74, %75 : vector<8x96xf32>
    %77 = vector.extract_strided_slice %70 {offsets = [0, 96], sizes = [8, 32], strides = [1, 1]} : vector<8x128xf32> to vector<8x32xf32>
    %78 = math.tanh %77 : vector<8x32xf32>
    %79 = vector.extract_strided_slice %76 {offsets = [0, 0], sizes = [8, 32], strides = [1, 1]} : vector<8x96xf32> to vector<8x32xf32>
    %80 = vector.extract_strided_slice %76 {offsets = [0, 32], sizes = [8, 32], strides = [1, 1]} : vector<8x96xf32> to vector<8x32xf32>
    %81 = vector.extract_strided_slice %76 {offsets = [0, 64], sizes = [8, 32], strides = [1, 1]} : vector<8x96xf32> to vector<8x32xf32>
    %82 = arith.mulf %80, %59 : vector<8x32xf32>
    %83 = arith.mulf %79, %78 : vector<8x32xf32>
    %84 = arith.addf %82, %83 : vector<8x32xf32>
    %85 = math.tanh %84 : vector<8x32xf32>
    %86 = arith.mulf %81, %85 : vector<8x32xf32>
    %87 = arith.truncf %86 : vector<8x32xf32> to vector<8x32xbf16>
    %88 = arith.index_cast %65 : i32 to index
    %c0_30 = arith.constant 0 : index
    %89 = vector.load %arg12[%88, %c0_30] : memref<64x32xbf16, #tpu.memory_space<vmem>>, vector<8x32xbf16>
    tpu.vector_store %arg12[%88, %c0_30], %87 {strides = array<i32>} : memref<64x32xbf16, #tpu.memory_space<vmem>>, vector<8x32xbf16>,
    %c3_i32 = arith.constant 3 : i32
    %c8_i32_31 = arith.constant 8 : i32
    %90 = arith.muli %c3_i32, %c8_i32_31 : i32
    %91 = arith.index_cast %90 : i32 to index
    %c0_32 = arith.constant 0 : index
    %92 = vector.load %arg11[%91, %c0_32] : memref<64x128xf32, #tpu.memory_space<vmem>>, vector<8x128xf32>
    %93 = arith.truncf %86 : vector<8x32xf32> to vector<8x32xbf16>
    %cst_33 = arith.constant dense<0.000000e+00> : vector<8x128xf32>
    %94 = tpu.matmul %93, %4, %cst_33 {dimension_numbers = #tpu.dot_dimension_numbers<[1], [0], [0], [1], [0, 0, 1, 1], [], []>} : vector<8x32xbf16>, vector<32x128xbf16>, vector<8x128xf32> -> vector<8x128xf32>
    %95 = arith.addf %92, %94 : vector<8x128xf32>
    %96 = vector.extract_strided_slice %95 {offsets = [0, 0], sizes = [8, 96], strides = [1, 1]} : vector<8x128xf32> to vector<8x96xf32>
    %97 = arith.negf %96 : vector<8x96xf32>
    %98 = math.exp %97 : vector<8x96xf32>
    %cst_34 = arith.constant 1.000000e+00 : f32
    %99 = vector.broadcast %cst_34 : f32 to vector<8x96xf32>
    %100 = arith.addf %99, %98 : vector<8x96xf32>
    %101 = arith.divf %99, %100 : vector<8x96xf32>
    %102 = vector.extract_strided_slice %95 {offsets = [0, 96], sizes = [8, 32], strides = [1, 1]} : vector<8x128xf32> to vector<8x32xf32>
    %103 = math.tanh %102 : vector<8x32xf32>
    %104 = vector.extract_strided_slice %101 {offsets = [0, 0], sizes = [8, 32], strides = [1, 1]} : vector<8x96xf32> to vector<8x32xf32>
    %105 = vector.extract_strided_slice %101 {offsets = [0, 32], sizes = [8, 32], strides = [1, 1]} : vector<8x96xf32> to vector<8x32xf32>
    %106 = vector.extract_strided_slice %101 {offsets = [0, 64], sizes = [8, 32], strides = [1, 1]} : vector<8x96xf32> to vector<8x32xf32>
    %107 = arith.mulf %105, %84 : vector<8x32xf32>
    %108 = arith.mulf %104, %103 : vector<8x32xf32>
    %109 = arith.addf %107, %108 : vector<8x32xf32>
    %110 = math.tanh %109 : vector<8x32xf32>
    %111 = arith.mulf %106, %110 : vector<8x32xf32>
    %112 = arith.truncf %111 : vector<8x32xf32> to vector<8x32xbf16>
    %113 = arith.index_cast %90 : i32 to index
    %c0_35 = arith.constant 0 : index
    %114 = vector.load %arg12[%113, %c0_35] : memref<64x32xbf16, #tpu.memory_space<vmem>>, vector<8x32xbf16>
    tpu.vector_store %arg12[%113, %c0_35], %112 {strides = array<i32>} : memref<64x32xbf16, #tpu.memory_space<vmem>>, vector<8x32xbf16>,
    %c4_i32 = arith.constant 4 : i32
    %c8_i32_36 = arith.constant 8 : i32
    %115 = arith.muli %c4_i32, %c8_i32_36 : i32
    %116 = arith.index_cast %115 : i32 to index
    %c0_37 = arith.constant 0 : index
    %117 = vector.load %arg11[%116, %c0_37] : memref<64x128xf32, #tpu.memory_space<vmem>>, vector<8x128xf32>
    %118 = arith.truncf %111 : vector<8x32xf32> to vector<8x32xbf16>
    %cst_38 = arith.constant dense<0.000000e+00> : vector<8x128xf32>
    %119 = tpu.matmul %118, %4, %cst_38 {dimension_numbers = #tpu.dot_dimension_numbers<[1], [0], [0], [1], [0, 0, 1, 1], [], []>} : vector<8x32xbf16>, vector<32x128xbf16>, vector<8x128xf32> -> vector<8x128xf32>
    %120 = arith.addf %117, %119 : vector<8x128xf32>
    %121 = vector.extract_strided_slice %120 {offsets = [0, 0], sizes = [8, 96], strides = [1, 1]} : vector<8x128xf32> to vector<8x96xf32>
    %122 = arith.negf %121 : vector<8x96xf32>
    %123 = math.exp %122 : vector<8x96xf32>
    %cst_39 = arith.constant 1.000000e+00 : f32
    %124 = vector.broadcast %cst_39 : f32 to vector<8x96xf32>
    %125 = arith.addf %124, %123 : vector<8x96xf32>
    %126 = arith.divf %124, %125 : vector<8x96xf32>
    %127 = vector.extract_strided_slice %120 {offsets = [0, 96], sizes = [8, 32], strides = [1, 1]} : vector<8x128xf32> to vector<8x32xf32>
    %128 = math.tanh %127 : vector<8x32xf32>
    %129 = vector.extract_strided_slice %126 {offsets = [0, 0], sizes = [8, 32], strides = [1, 1]} : vector<8x96xf32> to vector<8x32xf32>
    %130 = vector.extract_strided_slice %126 {offsets = [0, 32], sizes = [8, 32], strides = [1, 1]} : vector<8x96xf32> to vector<8x32xf32>
    %131 = vector.extract_strided_slice %126 {offsets = [0, 64], sizes = [8, 32], strides = [1, 1]} : vector<8x96xf32> to vector<8x32xf32>
    %132 = arith.mulf %130, %109 : vector<8x32xf32>
    %133 = arith.mulf %129, %128 : vector<8x32xf32>
    %134 = arith.addf %132, %133 : vector<8x32xf32>
    %135 = math.tanh %134 : vector<8x32xf32>
    %136 = arith.mulf %131, %135 : vector<8x32xf32>
    %137 = arith.truncf %136 : vector<8x32xf32> to vector<8x32xbf16>
    %138 = arith.index_cast %115 : i32 to index
    %c0_40 = arith.constant 0 : index
    %139 = vector.load %arg12[%138, %c0_40] : memref<64x32xbf16, #tpu.memory_space<vmem>>, vector<8x32xbf16>
    tpu.vector_store %arg12[%138, %c0_40], %137 {strides = array<i32>} : memref<64x32xbf16, #tpu.memory_space<vmem>>, vector<8x32xbf16>,
    %c5_i32 = arith.constant 5 : i32
    %c8_i32_41 = arith.constant 8 : i32
    %140 = arith.muli %c5_i32, %c8_i32_41 : i32
    %141 = arith.index_cast %140 : i32 to index
    %c0_42 = arith.constant 0 : index
    %142 = vector.load %arg11[%141, %c0_42] : memref<64x128xf32, #tpu.memory_space<vmem>>, vector<8x128xf32>
    %143 = arith.truncf %136 : vector<8x32xf32> to vector<8x32xbf16>
    %cst_43 = arith.constant dense<0.000000e+00> : vector<8x128xf32>
    %144 = tpu.matmul %143, %4, %cst_43 {dimension_numbers = #tpu.dot_dimension_numbers<[1], [0], [0], [1], [0, 0, 1, 1], [], []>} : vector<8x32xbf16>, vector<32x128xbf16>, vector<8x128xf32> -> vector<8x128xf32>
    %145 = arith.addf %142, %144 : vector<8x128xf32>
    %146 = vector.extract_strided_slice %145 {offsets = [0, 0], sizes = [8, 96], strides = [1, 1]} : vector<8x128xf32> to vector<8x96xf32>
    %147 = arith.negf %146 : vector<8x96xf32>
    %148 = math.exp %147 : vector<8x96xf32>
    %cst_44 = arith.constant 1.000000e+00 : f32
    %149 = vector.broadcast %cst_44 : f32 to vector<8x96xf32>
    %150 = arith.addf %149, %148 : vector<8x96xf32>
    %151 = arith.divf %149, %150 : vector<8x96xf32>
    %152 = vector.extract_strided_slice %145 {offsets = [0, 96], sizes = [8, 32], strides = [1, 1]} : vector<8x128xf32> to vector<8x32xf32>
    %153 = math.tanh %152 : vector<8x32xf32>
    %154 = vector.extract_strided_slice %151 {offsets = [0, 0], sizes = [8, 32], strides = [1, 1]} : vector<8x96xf32> to vector<8x32xf32>
    %155 = vector.extract_strided_slice %151 {offsets = [0, 32], sizes = [8, 32], strides = [1, 1]} : vector<8x96xf32> to vector<8x32xf32>
    %156 = vector.extract_strided_slice %151 {offsets = [0, 64], sizes = [8, 32], strides = [1, 1]} : vector<8x96xf32> to vector<8x32xf32>
    %157 = arith.mulf %155, %134 : vector<8x32xf32>
    %158 = arith.mulf %154, %153 : vector<8x32xf32>
    %159 = arith.addf %157, %158 : vector<8x32xf32>
    %160 = math.tanh %159 : vector<8x32xf32>
    %161 = arith.mulf %156, %160 : vector<8x32xf32>
    %162 = arith.truncf %161 : vector<8x32xf32> to vector<8x32xbf16>
    %163 = arith.index_cast %140 : i32 to index
    %c0_45 = arith.constant 0 : index
    %164 = vector.load %arg12[%163, %c0_45] : memref<64x32xbf16, #tpu.memory_space<vmem>>, vector<8x32xbf16>
    tpu.vector_store %arg12[%163, %c0_45], %162 {strides = array<i32>} : memref<64x32xbf16, #tpu.memory_space<vmem>>, vector<8x32xbf16>,
    %c6_i32 = arith.constant 6 : i32
    %c8_i32_46 = arith.constant 8 : i32
    %165 = arith.muli %c6_i32, %c8_i32_46 : i32
    %166 = arith.index_cast %165 : i32 to index
    %c0_47 = arith.constant 0 : index
    %167 = vector.load %arg11[%166, %c0_47] : memref<64x128xf32, #tpu.memory_space<vmem>>, vector<8x128xf32>
    %168 = arith.truncf %161 : vector<8x32xf32> to vector<8x32xbf16>
    %cst_48 = arith.constant dense<0.000000e+00> : vector<8x128xf32>
    %169 = tpu.matmul %168, %4, %cst_48 {dimension_numbers = #tpu.dot_dimension_numbers<[1], [0], [0], [1], [0, 0, 1, 1], [], []>} : vector<8x32xbf16>, vector<32x128xbf16>, vector<8x128xf32> -> vector<8x128xf32>
    %170 = arith.addf %167, %169 : vector<8x128xf32>
    %171 = vector.extract_strided_slice %170 {offsets = [0, 0], sizes = [8, 96], strides = [1, 1]} : vector<8x128xf32> to vector<8x96xf32>
    %172 = arith.negf %171 : vector<8x96xf32>
    %173 = math.exp %172 : vector<8x96xf32>
    %cst_49 = arith.constant 1.000000e+00 : f32
    %174 = vector.broadcast %cst_49 : f32 to vector<8x96xf32>
    %175 = arith.addf %174, %173 : vector<8x96xf32>
    %176 = arith.divf %174, %175 : vector<8x96xf32>
    %177 = vector.extract_strided_slice %170 {offsets = [0, 96], sizes = [8, 32], strides = [1, 1]} : vector<8x128xf32> to vector<8x32xf32>
    %178 = math.tanh %177 : vector<8x32xf32>
    %179 = vector.extract_strided_slice %176 {offsets = [0, 0], sizes = [8, 32], strides = [1, 1]} : vector<8x96xf32> to vector<8x32xf32>
    %180 = vector.extract_strided_slice %176 {offsets = [0, 32], sizes = [8, 32], strides = [1, 1]} : vector<8x96xf32> to vector<8x32xf32>
    %181 = vector.extract_strided_slice %176 {offsets = [0, 64], sizes = [8, 32], strides = [1, 1]} : vector<8x96xf32> to vector<8x32xf32>
    %182 = arith.mulf %180, %159 : vector<8x32xf32>
    %183 = arith.mulf %179, %178 : vector<8x32xf32>
    %184 = arith.addf %182, %183 : vector<8x32xf32>
    %185 = math.tanh %184 : vector<8x32xf32>
    %186 = arith.mulf %181, %185 : vector<8x32xf32>
    %187 = arith.truncf %186 : vector<8x32xf32> to vector<8x32xbf16>
    %188 = arith.index_cast %165 : i32 to index
    %c0_50 = arith.constant 0 : index
    %189 = vector.load %arg12[%188, %c0_50] : memref<64x32xbf16, #tpu.memory_space<vmem>>, vector<8x32xbf16>
    tpu.vector_store %arg12[%188, %c0_50], %187 {strides = array<i32>} : memref<64x32xbf16, #tpu.memory_space<vmem>>, vector<8x32xbf16>,
    %c7_i32 = arith.constant 7 : i32
    %c8_i32_51 = arith.constant 8 : i32
    %190 = arith.muli %c7_i32, %c8_i32_51 : i32
    %191 = arith.index_cast %190 : i32 to index
    %c0_52 = arith.constant 0 : index
    %192 = vector.load %arg11[%191, %c0_52] : memref<64x128xf32, #tpu.memory_space<vmem>>, vector<8x128xf32>
    %193 = arith.truncf %186 : vector<8x32xf32> to vector<8x32xbf16>
    %cst_53 = arith.constant dense<0.000000e+00> : vector<8x128xf32>
    %194 = tpu.matmul %193, %4, %cst_53 {dimension_numbers = #tpu.dot_dimension_numbers<[1], [0], [0], [1], [0, 0, 1, 1], [], []>} : vector<8x32xbf16>, vector<32x128xbf16>, vector<8x128xf32> -> vector<8x128xf32>
    %195 = arith.addf %192, %194 : vector<8x128xf32>
    %196 = vector.extract_strided_slice %195 {offsets = [0, 0], sizes = [8, 96], strides = [1, 1]} : vector<8x128xf32> to vector<8x96xf32>
    %197 = arith.negf %196 : vector<8x96xf32>
    %198 = math.exp %197 : vector<8x96xf32>
    %cst_54 = arith.constant 1.000000e+00 : f32
    %199 = vector.broadcast %cst_54 : f32 to vector<8x96xf32>
    %200 = arith.addf %199, %198 : vector<8x96xf32>
    %201 = arith.divf %199, %200 : vector<8x96xf32>
    %202 = vector.extract_strided_slice %195 {offsets = [0, 96], sizes = [8, 32], strides = [1, 1]} : vector<8x128xf32> to vector<8x32xf32>
    %203 = math.tanh %202 : vector<8x32xf32>
    %204 = vector.extract_strided_slice %201 {offsets = [0, 0], sizes = [8, 32], strides = [1, 1]} : vector<8x96xf32> to vector<8x32xf32>
    %205 = vector.extract_strided_slice %201 {offsets = [0, 32], sizes = [8, 32], strides = [1, 1]} : vector<8x96xf32> to vector<8x32xf32>
    %206 = vector.extract_strided_slice %201 {offsets = [0, 64], sizes = [8, 32], strides = [1, 1]} : vector<8x96xf32> to vector<8x32xf32>
    %207 = arith.mulf %205, %184 : vector<8x32xf32>
    %208 = arith.mulf %204, %203 : vector<8x32xf32>
    %209 = arith.addf %207, %208 : vector<8x32xf32>
    %210 = math.tanh %209 : vector<8x32xf32>
    %211 = arith.mulf %206, %210 : vector<8x32xf32>
    %212 = arith.truncf %211 : vector<8x32xf32> to vector<8x32xbf16>
    %213 = arith.index_cast %190 : i32 to index
    %c0_55 = arith.constant 0 : index
    %214 = vector.load %arg12[%213, %c0_55] : memref<64x32xbf16, #tpu.memory_space<vmem>>, vector<8x32xbf16>
    tpu.vector_store %arg12[%213, %c0_55], %212 {strides = array<i32>} : memref<64x32xbf16, #tpu.memory_space<vmem>>, vector<8x32xbf16>,
    %c8_i32_56 = arith.constant 8 : i32
    %c0_57 = arith.constant 0 : index
    %c0_58 = arith.constant 0 : index
    %c0_59 = arith.constant 0 : index
    %215 = vector.load %arg9[%c0_57, %c0_58, %c0_59] : memref<2x8x32xf32, #tpu.memory_space<vmem>>, vector<1x8x32xf32>
    %216 = vector.shape_cast %215 : vector<1x8x32xf32> to vector<8x32xf32>
    %217 = vector.shape_cast %211 : vector<8x32xf32> to vector<1x8x32xf32>
    tpu.vector_store %arg9[%c0_57, %c0_58, %c0_59], %217 {strides = array<i32>} : memref<2x8x32xf32, #tpu.memory_space<vmem>>, vector<1x8x32xf32>,
    %c0_60 = arith.constant 0 : index
    %c0_61 = arith.constant 0 : index
    %c0_62 = arith.constant 0 : index
    %218 = vector.load %arg10[%c0_60, %c0_61, %c0_62] : memref<2x8x32xf32, #tpu.memory_space<vmem>>, vector<1x8x32xf32>
    %219 = vector.shape_cast %218 : vector<1x8x32xf32> to vector<8x32xf32>
    %220 = vector.shape_cast %209 : vector<8x32xf32> to vector<1x8x32xf32>
    tpu.vector_store %arg10[%c0_60, %c0_61, %c0_62], %220 {strides = array<i32>} : memref<2x8x32xf32, #tpu.memory_space<vmem>>, vector<1x8x32xf32>,
    %c0_63 = arith.constant 0 : index
    %c0_64 = arith.constant 0 : index
    %221 = vector.load %arg5[%c0_63, %c0_64] : memref<32x128xbf16, #tpu.memory_space<vmem>>, vector<32x128xbf16>
    %c0_65 = arith.constant 0 : index
    %c0_66 = arith.constant 0 : index
    %222 = vector.load %arg6[%c0_65, %c0_66] : memref<32x128xbf16, #tpu.memory_space<vmem>>, vector<32x128xbf16>
    %c0_67 = arith.constant 0 : index
    %c0_68 = arith.constant 0 : index
    %223 = vector.load %arg7[%c0_67, %c0_68] : memref<1x128xf32, #tpu.memory_space<vmem>>, vector<1x128xf32>
    %c0_69 = arith.constant 0 : index
    %c0_70 = arith.constant 0 : index
    %224 = vector.load %arg12[%c0_69, %c0_70] : memref<64x32xbf16, #tpu.memory_space<vmem>>, vector<64x32xbf16>
    %cst_71 = arith.constant dense<0.000000e+00> : vector<64x128xf32>
    %225 = tpu.matmul %224, %221, %cst_71 {dimension_numbers = #tpu.dot_dimension_numbers<[1], [0], [0], [1], [0, 0, 1, 1], [], []>} : vector<64x32xbf16>, vector<32x128xbf16>, vector<64x128xf32> -> vector<64x128xf32>
    %226 = vector.broadcast %223 : vector<1x128xf32> to vector<64x128xf32>
    %227 = arith.addf %225, %226 : vector<64x128xf32>
    %c0_72 = arith.constant 0 : index
    %c0_73 = arith.constant 0 : index
    %228 = vector.load %arg11[%c0_72, %c0_73] : memref<64x128xf32, #tpu.memory_space<vmem>>, vector<64x128xf32>
    tpu.vector_store %arg11[%c0_72, %c0_73], %227 {strides = array<i32>} : memref<64x128xf32, #tpu.memory_space<vmem>>, vector<64x128xf32>,
    %c1 = arith.constant 1 : index
    %c0_74 = arith.constant 0 : index
    %c0_75 = arith.constant 0 : index
    %229 = vector.load %arg9[%c1, %c0_74, %c0_75] : memref<2x8x32xf32, #tpu.memory_space<vmem>>, vector<1x8x32xf32>
    %230 = vector.shape_cast %229 : vector<1x8x32xf32> to vector<8x32xf32>
    %c1_76 = arith.constant 1 : index
    %c0_77 = arith.constant 0 : index
    %c0_78 = arith.constant 0 : index
    %231 = vector.load %arg10[%c1_76, %c0_77, %c0_78] : memref<2x8x32xf32, #tpu.memory_space<vmem>>, vector<1x8x32xf32>
    %232 = vector.shape_cast %231 : vector<1x8x32xf32> to vector<8x32xf32>
    %c0_i32_79 = arith.constant 0 : i32
    %c8_i32_80 = arith.constant 8 : i32
    %233 = arith.muli %c0_i32_79, %c8_i32_80 : i32
    %234 = arith.index_cast %233 : i32 to index
    %c0_81 = arith.constant 0 : index
    %235 = vector.load %arg11[%234, %c0_81] : memref<64x128xf32, #tpu.memory_space<vmem>>, vector<8x128xf32>
    %236 = arith.truncf %230 : vector<8x32xf32> to vector<8x32xbf16>
    %cst_82 = arith.constant dense<0.000000e+00> : vector<8x128xf32>
    %237 = tpu.matmul %236, %222, %cst_82 {dimension_numbers = #tpu.dot_dimension_numbers<[1], [0], [0], [1], [0, 0, 1, 1], [], []>} : vector<8x32xbf16>, vector<32x128xbf16>, vector<8x128xf32> -> vector<8x128xf32>
    %238 = arith.addf %235, %237 : vector<8x128xf32>
    %239 = vector.extract_strided_slice %238 {offsets = [0, 0], sizes = [8, 96], strides = [1, 1]} : vector<8x128xf32> to vector<8x96xf32>
    %240 = arith.negf %239 : vector<8x96xf32>
    %241 = math.exp %240 : vector<8x96xf32>
    %cst_83 = arith.constant 1.000000e+00 : f32
    %242 = vector.broadcast %cst_83 : f32 to vector<8x96xf32>
    %243 = arith.addf %242, %241 : vector<8x96xf32>
    %244 = arith.divf %242, %243 : vector<8x96xf32>
    %245 = vector.extract_strided_slice %238 {offsets = [0, 96], sizes = [8, 32], strides = [1, 1]} : vector<8x128xf32> to vector<8x32xf32>
    %246 = math.tanh %245 : vector<8x32xf32>
    %247 = vector.extract_strided_slice %244 {offsets = [0, 0], sizes = [8, 32], strides = [1, 1]} : vector<8x96xf32> to vector<8x32xf32>
    %248 = vector.extract_strided_slice %244 {offsets = [0, 32], sizes = [8, 32], strides = [1, 1]} : vector<8x96xf32> to vector<8x32xf32>
    %249 = vector.extract_strided_slice %244 {offsets = [0, 64], sizes = [8, 32], strides = [1, 1]} : vector<8x96xf32> to vector<8x32xf32>
    %250 = arith.mulf %248, %232 : vector<8x32xf32>
    %251 = arith.mulf %247, %246 : vector<8x32xf32>
    %252 = arith.addf %250, %251 : vector<8x32xf32>
    %253 = math.tanh %252 : vector<8x32xf32>
    %254 = arith.mulf %249, %253 : vector<8x32xf32>
    %255 = arith.index_cast %233 : i32 to index
    %c0_84 = arith.constant 0 : index
    %256 = vector.load %arg8[%255, %c0_84] : memref<64x32xf32, #tpu.memory_space<vmem>>, vector<8x32xf32>
    tpu.vector_store %arg8[%255, %c0_84], %254 {strides = array<i32>} : memref<64x32xf32, #tpu.memory_space<vmem>>, vector<8x32xf32>,
    %c1_i32_85 = arith.constant 1 : i32
    %c8_i32_86 = arith.constant 8 : i32
    %257 = arith.muli %c1_i32_85, %c8_i32_86 : i32
    %258 = arith.index_cast %257 : i32 to index
    %c0_87 = arith.constant 0 : index
    %259 = vector.load %arg11[%258, %c0_87] : memref<64x128xf32, #tpu.memory_space<vmem>>, vector<8x128xf32>
    %260 = arith.truncf %254 : vector<8x32xf32> to vector<8x32xbf16>
    %cst_88 = arith.constant dense<0.000000e+00> : vector<8x128xf32>
    %261 = tpu.matmul %260, %222, %cst_88 {dimension_numbers = #tpu.dot_dimension_numbers<[1], [0], [0], [1], [0, 0, 1, 1], [], []>} : vector<8x32xbf16>, vector<32x128xbf16>, vector<8x128xf32> -> vector<8x128xf32>
    %262 = arith.addf %259, %261 : vector<8x128xf32>
    %263 = vector.extract_strided_slice %262 {offsets = [0, 0], sizes = [8, 96], strides = [1, 1]} : vector<8x128xf32> to vector<8x96xf32>
    %264 = arith.negf %263 : vector<8x96xf32>
    %265 = math.exp %264 : vector<8x96xf32>
    %cst_89 = arith.constant 1.000000e+00 : f32
    %266 = vector.broadcast %cst_89 : f32 to vector<8x96xf32>
    %267 = arith.addf %266, %265 : vector<8x96xf32>
    %268 = arith.divf %266, %267 : vector<8x96xf32>
    %269 = vector.extract_strided_slice %262 {offsets = [0, 96], sizes = [8, 32], strides = [1, 1]} : vector<8x128xf32> to vector<8x32xf32>
    %270 = math.tanh %269 : vector<8x32xf32>
    %271 = vector.extract_strided_slice %268 {offsets = [0, 0], sizes = [8, 32], strides = [1, 1]} : vector<8x96xf32> to vector<8x32xf32>
    %272 = vector.extract_strided_slice %268 {offsets = [0, 32], sizes = [8, 32], strides = [1, 1]} : vector<8x96xf32> to vector<8x32xf32>
    %273 = vector.extract_strided_slice %268 {offsets = [0, 64], sizes = [8, 32], strides = [1, 1]} : vector<8x96xf32> to vector<8x32xf32>
    %274 = arith.mulf %272, %252 : vector<8x32xf32>
    %275 = arith.mulf %271, %270 : vector<8x32xf32>
    %276 = arith.addf %274, %275 : vector<8x32xf32>
    %277 = math.tanh %276 : vector<8x32xf32>
    %278 = arith.mulf %273, %277 : vector<8x32xf32>
    %279 = arith.index_cast %257 : i32 to index
    %c0_90 = arith.constant 0 : index
    %280 = vector.load %arg8[%279, %c0_90] : memref<64x32xf32, #tpu.memory_space<vmem>>, vector<8x32xf32>
    tpu.vector_store %arg8[%279, %c0_90], %278 {strides = array<i32>} : memref<64x32xf32, #tpu.memory_space<vmem>>, vector<8x32xf32>,
    %c2_i32_91 = arith.constant 2 : i32
    %c8_i32_92 = arith.constant 8 : i32
    %281 = arith.muli %c2_i32_91, %c8_i32_92 : i32
    %282 = arith.index_cast %281 : i32 to index
    %c0_93 = arith.constant 0 : index
    %283 = vector.load %arg11[%282, %c0_93] : memref<64x128xf32, #tpu.memory_space<vmem>>, vector<8x128xf32>
    %284 = arith.truncf %278 : vector<8x32xf32> to vector<8x32xbf16>
    %cst_94 = arith.constant dense<0.000000e+00> : vector<8x128xf32>
    %285 = tpu.matmul %284, %222, %cst_94 {dimension_numbers = #tpu.dot_dimension_numbers<[1], [0], [0], [1], [0, 0, 1, 1], [], []>} : vector<8x32xbf16>, vector<32x128xbf16>, vector<8x128xf32> -> vector<8x128xf32>
    %286 = arith.addf %283, %285 : vector<8x128xf32>
    %287 = vector.extract_strided_slice %286 {offsets = [0, 0], sizes = [8, 96], strides = [1, 1]} : vector<8x128xf32> to vector<8x96xf32>
    %288 = arith.negf %287 : vector<8x96xf32>
    %289 = math.exp %288 : vector<8x96xf32>
    %cst_95 = arith.constant 1.000000e+00 : f32
    %290 = vector.broadcast %cst_95 : f32 to vector<8x96xf32>
    %291 = arith.addf %290, %289 : vector<8x96xf32>
    %292 = arith.divf %290, %291 : vector<8x96xf32>
    %293 = vector.extract_strided_slice %286 {offsets = [0, 96], sizes = [8, 32], strides = [1, 1]} : vector<8x128xf32> to vector<8x32xf32>
    %294 = math.tanh %293 : vector<8x32xf32>
    %295 = vector.extract_strided_slice %292 {offsets = [0, 0], sizes = [8, 32], strides = [1, 1]} : vector<8x96xf32> to vector<8x32xf32>
    %296 = vector.extract_strided_slice %292 {offsets = [0, 32], sizes = [8, 32], strides = [1, 1]} : vector<8x96xf32> to vector<8x32xf32>
    %297 = vector.extract_strided_slice %292 {offsets = [0, 64], sizes = [8, 32], strides = [1, 1]} : vector<8x96xf32> to vector<8x32xf32>
    %298 = arith.mulf %296, %276 : vector<8x32xf32>
    %299 = arith.mulf %295, %294 : vector<8x32xf32>
    %300 = arith.addf %298, %299 : vector<8x32xf32>
    %301 = math.tanh %300 : vector<8x32xf32>
    %302 = arith.mulf %297, %301 : vector<8x32xf32>
    %303 = arith.index_cast %281 : i32 to index
    %c0_96 = arith.constant 0 : index
    %304 = vector.load %arg8[%303, %c0_96] : memref<64x32xf32, #tpu.memory_space<vmem>>, vector<8x32xf32>
    tpu.vector_store %arg8[%303, %c0_96], %302 {strides = array<i32>} : memref<64x32xf32, #tpu.memory_space<vmem>>, vector<8x32xf32>,
    %c3_i32_97 = arith.constant 3 : i32
    %c8_i32_98 = arith.constant 8 : i32
    %305 = arith.muli %c3_i32_97, %c8_i32_98 : i32
    %306 = arith.index_cast %305 : i32 to index
    %c0_99 = arith.constant 0 : index
    %307 = vector.load %arg11[%306, %c0_99] : memref<64x128xf32, #tpu.memory_space<vmem>>, vector<8x128xf32>
    %308 = arith.truncf %302 : vector<8x32xf32> to vector<8x32xbf16>
    %cst_100 = arith.constant dense<0.000000e+00> : vector<8x128xf32>
    %309 = tpu.matmul %308, %222, %cst_100 {dimension_numbers = #tpu.dot_dimension_numbers<[1], [0], [0], [1], [0, 0, 1, 1], [], []>} : vector<8x32xbf16>, vector<32x128xbf16>, vector<8x128xf32> -> vector<8x128xf32>
    %310 = arith.addf %307, %309 : vector<8x128xf32>
    %311 = vector.extract_strided_slice %310 {offsets = [0, 0], sizes = [8, 96], strides = [1, 1]} : vector<8x128xf32> to vector<8x96xf32>
    %312 = arith.negf %311 : vector<8x96xf32>
    %313 = math.exp %312 : vector<8x96xf32>
    %cst_101 = arith.constant 1.000000e+00 : f32
    %314 = vector.broadcast %cst_101 : f32 to vector<8x96xf32>
    %315 = arith.addf %314, %313 : vector<8x96xf32>
    %316 = arith.divf %314, %315 : vector<8x96xf32>
    %317 = vector.extract_strided_slice %310 {offsets = [0, 96], sizes = [8, 32], strides = [1, 1]} : vector<8x128xf32> to vector<8x32xf32>
    %318 = math.tanh %317 : vector<8x32xf32>
    %319 = vector.extract_strided_slice %316 {offsets = [0, 0], sizes = [8, 32], strides = [1, 1]} : vector<8x96xf32> to vector<8x32xf32>
    %320 = vector.extract_strided_slice %316 {offsets = [0, 32], sizes = [8, 32], strides = [1, 1]} : vector<8x96xf32> to vector<8x32xf32>
    %321 = vector.extract_strided_slice %316 {offsets = [0, 64], sizes = [8, 32], strides = [1, 1]} : vector<8x96xf32> to vector<8x32xf32>
    %322 = arith.mulf %320, %300 : vector<8x32xf32>
    %323 = arith.mulf %319, %318 : vector<8x32xf32>
    %324 = arith.addf %322, %323 : vector<8x32xf32>
    %325 = math.tanh %324 : vector<8x32xf32>
    %326 = arith.mulf %321, %325 : vector<8x32xf32>
    %327 = arith.index_cast %305 : i32 to index
    %c0_102 = arith.constant 0 : index
    %328 = vector.load %arg8[%327, %c0_102] : memref<64x32xf32, #tpu.memory_space<vmem>>, vector<8x32xf32>
    tpu.vector_store %arg8[%327, %c0_102], %326 {strides = array<i32>} : memref<64x32xf32, #tpu.memory_space<vmem>>, vector<8x32xf32>,
    %c4_i32_103 = arith.constant 4 : i32
    %c8_i32_104 = arith.constant 8 : i32
    %329 = arith.muli %c4_i32_103, %c8_i32_104 : i32
    %330 = arith.index_cast %329 : i32 to index
    %c0_105 = arith.constant 0 : index
    %331 = vector.load %arg11[%330, %c0_105] : memref<64x128xf32, #tpu.memory_space<vmem>>, vector<8x128xf32>
    %332 = arith.truncf %326 : vector<8x32xf32> to vector<8x32xbf16>
    %cst_106 = arith.constant dense<0.000000e+00> : vector<8x128xf32>
    %333 = tpu.matmul %332, %222, %cst_106 {dimension_numbers = #tpu.dot_dimension_numbers<[1], [0], [0], [1], [0, 0, 1, 1], [], []>} : vector<8x32xbf16>, vector<32x128xbf16>, vector<8x128xf32> -> vector<8x128xf32>
    %334 = arith.addf %331, %333 : vector<8x128xf32>
    %335 = vector.extract_strided_slice %334 {offsets = [0, 0], sizes = [8, 96], strides = [1, 1]} : vector<8x128xf32> to vector<8x96xf32>
    %336 = arith.negf %335 : vector<8x96xf32>
    %337 = math.exp %336 : vector<8x96xf32>
    %cst_107 = arith.constant 1.000000e+00 : f32
    %338 = vector.broadcast %cst_107 : f32 to vector<8x96xf32>
    %339 = arith.addf %338, %337 : vector<8x96xf32>
    %340 = arith.divf %338, %339 : vector<8x96xf32>
    %341 = vector.extract_strided_slice %334 {offsets = [0, 96], sizes = [8, 32], strides = [1, 1]} : vector<8x128xf32> to vector<8x32xf32>
    %342 = math.tanh %341 : vector<8x32xf32>
    %343 = vector.extract_strided_slice %340 {offsets = [0, 0], sizes = [8, 32], strides = [1, 1]} : vector<8x96xf32> to vector<8x32xf32>
    %344 = vector.extract_strided_slice %340 {offsets = [0, 32], sizes = [8, 32], strides = [1, 1]} : vector<8x96xf32> to vector<8x32xf32>
    %345 = vector.extract_strided_slice %340 {offsets = [0, 64], sizes = [8, 32], strides = [1, 1]} : vector<8x96xf32> to vector<8x32xf32>
    %346 = arith.mulf %344, %324 : vector<8x32xf32>
    %347 = arith.mulf %343, %342 : vector<8x32xf32>
    %348 = arith.addf %346, %347 : vector<8x32xf32>
    %349 = math.tanh %348 : vector<8x32xf32>
    %350 = arith.mulf %345, %349 : vector<8x32xf32>
    %351 = arith.index_cast %329 : i32 to index
    %c0_108 = arith.constant 0 : index
    %352 = vector.load %arg8[%351, %c0_108] : memref<64x32xf32, #tpu.memory_space<vmem>>, vector<8x32xf32>
    tpu.vector_store %arg8[%351, %c0_108], %350 {strides = array<i32>} : memref<64x32xf32, #tpu.memory_space<vmem>>, vector<8x32xf32>,
    %c5_i32_109 = arith.constant 5 : i32
    %c8_i32_110 = arith.constant 8 : i32
    %353 = arith.muli %c5_i32_109, %c8_i32_110 : i32
    %354 = arith.index_cast %353 : i32 to index
    %c0_111 = arith.constant 0 : index
    %355 = vector.load %arg11[%354, %c0_111] : memref<64x128xf32, #tpu.memory_space<vmem>>, vector<8x128xf32>
    %356 = arith.truncf %350 : vector<8x32xf32> to vector<8x32xbf16>
    %cst_112 = arith.constant dense<0.000000e+00> : vector<8x128xf32>
    %357 = tpu.matmul %356, %222, %cst_112 {dimension_numbers = #tpu.dot_dimension_numbers<[1], [0], [0], [1], [0, 0, 1, 1], [], []>} : vector<8x32xbf16>, vector<32x128xbf16>, vector<8x128xf32> -> vector<8x128xf32>
    %358 = arith.addf %355, %357 : vector<8x128xf32>
    %359 = vector.extract_strided_slice %358 {offsets = [0, 0], sizes = [8, 96], strides = [1, 1]} : vector<8x128xf32> to vector<8x96xf32>
    %360 = arith.negf %359 : vector<8x96xf32>
    %361 = math.exp %360 : vector<8x96xf32>
    %cst_113 = arith.constant 1.000000e+00 : f32
    %362 = vector.broadcast %cst_113 : f32 to vector<8x96xf32>
    %363 = arith.addf %362, %361 : vector<8x96xf32>
    %364 = arith.divf %362, %363 : vector<8x96xf32>
    %365 = vector.extract_strided_slice %358 {offsets = [0, 96], sizes = [8, 32], strides = [1, 1]} : vector<8x128xf32> to vector<8x32xf32>
    %366 = math.tanh %365 : vector<8x32xf32>
    %367 = vector.extract_strided_slice %364 {offsets = [0, 0], sizes = [8, 32], strides = [1, 1]} : vector<8x96xf32> to vector<8x32xf32>
    %368 = vector.extract_strided_slice %364 {offsets = [0, 32], sizes = [8, 32], strides = [1, 1]} : vector<8x96xf32> to vector<8x32xf32>
    %369 = vector.extract_strided_slice %364 {offsets = [0, 64], sizes = [8, 32], strides = [1, 1]} : vector<8x96xf32> to vector<8x32xf32>
    %370 = arith.mulf %368, %348 : vector<8x32xf32>
    %371 = arith.mulf %367, %366 : vector<8x32xf32>
    %372 = arith.addf %370, %371 : vector<8x32xf32>
    %373 = math.tanh %372 : vector<8x32xf32>
    %374 = arith.mulf %369, %373 : vector<8x32xf32>
    %375 = arith.index_cast %353 : i32 to index
    %c0_114 = arith.constant 0 : index
    %376 = vector.load %arg8[%375, %c0_114] : memref<64x32xf32, #tpu.memory_space<vmem>>, vector<8x32xf32>
    tpu.vector_store %arg8[%375, %c0_114], %374 {strides = array<i32>} : memref<64x32xf32, #tpu.memory_space<vmem>>, vector<8x32xf32>,
    %c6_i32_115 = arith.constant 6 : i32
    %c8_i32_116 = arith.constant 8 : i32
    %377 = arith.muli %c6_i32_115, %c8_i32_116 : i32
    %378 = arith.index_cast %377 : i32 to index
    %c0_117 = arith.constant 0 : index
    %379 = vector.load %arg11[%378, %c0_117] : memref<64x128xf32, #tpu.memory_space<vmem>>, vector<8x128xf32>
    %380 = arith.truncf %374 : vector<8x32xf32> to vector<8x32xbf16>
    %cst_118 = arith.constant dense<0.000000e+00> : vector<8x128xf32>
    %381 = tpu.matmul %380, %222, %cst_118 {dimension_numbers = #tpu.dot_dimension_numbers<[1], [0], [0], [1], [0, 0, 1, 1], [], []>} : vector<8x32xbf16>, vector<32x128xbf16>, vector<8x128xf32> -> vector<8x128xf32>
    %382 = arith.addf %379, %381 : vector<8x128xf32>
    %383 = vector.extract_strided_slice %382 {offsets = [0, 0], sizes = [8, 96], strides = [1, 1]} : vector<8x128xf32> to vector<8x96xf32>
    %384 = arith.negf %383 : vector<8x96xf32>
    %385 = math.exp %384 : vector<8x96xf32>
    %cst_119 = arith.constant 1.000000e+00 : f32
    %386 = vector.broadcast %cst_119 : f32 to vector<8x96xf32>
    %387 = arith.addf %386, %385 : vector<8x96xf32>
    %388 = arith.divf %386, %387 : vector<8x96xf32>
    %389 = vector.extract_strided_slice %382 {offsets = [0, 96], sizes = [8, 32], strides = [1, 1]} : vector<8x128xf32> to vector<8x32xf32>
    %390 = math.tanh %389 : vector<8x32xf32>
    %391 = vector.extract_strided_slice %388 {offsets = [0, 0], sizes = [8, 32], strides = [1, 1]} : vector<8x96xf32> to vector<8x32xf32>
    %392 = vector.extract_strided_slice %388 {offsets = [0, 32], sizes = [8, 32], strides = [1, 1]} : vector<8x96xf32> to vector<8x32xf32>
    %393 = vector.extract_strided_slice %388 {offsets = [0, 64], sizes = [8, 32], strides = [1, 1]} : vector<8x96xf32> to vector<8x32xf32>
    %394 = arith.mulf %392, %372 : vector<8x32xf32>
    %395 = arith.mulf %391, %390 : vector<8x32xf32>
    %396 = arith.addf %394, %395 : vector<8x32xf32>
    %397 = math.tanh %396 : vector<8x32xf32>
    %398 = arith.mulf %393, %397 : vector<8x32xf32>
    %399 = arith.index_cast %377 : i32 to index
    %c0_120 = arith.constant 0 : index
    %400 = vector.load %arg8[%399, %c0_120] : memref<64x32xf32, #tpu.memory_space<vmem>>, vector<8x32xf32>
    tpu.vector_store %arg8[%399, %c0_120], %398 {strides = array<i32>} : memref<64x32xf32, #tpu.memory_space<vmem>>, vector<8x32xf32>,
    %c7_i32_121 = arith.constant 7 : i32
    %c8_i32_122 = arith.constant 8 : i32
    %401 = arith.muli %c7_i32_121, %c8_i32_122 : i32
    %402 = arith.index_cast %401 : i32 to index
    %c0_123 = arith.constant 0 : index
    %403 = vector.load %arg11[%402, %c0_123] : memref<64x128xf32, #tpu.memory_space<vmem>>, vector<8x128xf32>
    %404 = arith.truncf %398 : vector<8x32xf32> to vector<8x32xbf16>
    %cst_124 = arith.constant dense<0.000000e+00> : vector<8x128xf32>
    %405 = tpu.matmul %404, %222, %cst_124 {dimension_numbers = #tpu.dot_dimension_numbers<[1], [0], [0], [1], [0, 0, 1, 1], [], []>} : vector<8x32xbf16>, vector<32x128xbf16>, vector<8x128xf32> -> vector<8x128xf32>
    %406 = arith.addf %403, %405 : vector<8x128xf32>
    %407 = vector.extract_strided_slice %406 {offsets = [0, 0], sizes = [8, 96], strides = [1, 1]} : vector<8x128xf32> to vector<8x96xf32>
    %408 = arith.negf %407 : vector<8x96xf32>
    %409 = math.exp %408 : vector<8x96xf32>
    %cst_125 = arith.constant 1.000000e+00 : f32
    %410 = vector.broadcast %cst_125 : f32 to vector<8x96xf32>
    %411 = arith.addf %410, %409 : vector<8x96xf32>
    %412 = arith.divf %410, %411 : vector<8x96xf32>
    %413 = vector.extract_strided_slice %406 {offsets = [0, 96], sizes = [8, 32], strides = [1, 1]} : vector<8x128xf32> to vector<8x32xf32>
    %414 = math.tanh %413 : vector<8x32xf32>
    %415 = vector.extract_strided_slice %412 {offsets = [0, 0], sizes = [8, 32], strides = [1, 1]} : vector<8x96xf32> to vector<8x32xf32>
    %416 = vector.extract_strided_slice %412 {offsets = [0, 32], sizes = [8, 32], strides = [1, 1]} : vector<8x96xf32> to vector<8x32xf32>
    %417 = vector.extract_strided_slice %412 {offsets = [0, 64], sizes = [8, 32], strides = [1, 1]} : vector<8x96xf32> to vector<8x32xf32>
    %418 = arith.mulf %416, %396 : vector<8x32xf32>
    %419 = arith.mulf %415, %414 : vector<8x32xf32>
    %420 = arith.addf %418, %419 : vector<8x32xf32>
    %421 = math.tanh %420 : vector<8x32xf32>
    %422 = arith.mulf %417, %421 : vector<8x32xf32>
    %423 = arith.index_cast %401 : i32 to index
    %c0_126 = arith.constant 0 : index
    %424 = vector.load %arg8[%423, %c0_126] : memref<64x32xf32, #tpu.memory_space<vmem>>, vector<8x32xf32>
    tpu.vector_store %arg8[%423, %c0_126], %422 {strides = array<i32>} : memref<64x32xf32, #tpu.memory_space<vmem>>, vector<8x32xf32>,
    %c8_i32_127 = arith.constant 8 : i32
    %c1_128 = arith.constant 1 : index
    %c0_129 = arith.constant 0 : index
    %c0_130 = arith.constant 0 : index
    %425 = vector.load %arg9[%c1_128, %c0_129, %c0_130] : memref<2x8x32xf32, #tpu.memory_space<vmem>>, vector<1x8x32xf32>
    %426 = vector.shape_cast %425 : vector<1x8x32xf32> to vector<8x32xf32>
    %427 = vector.shape_cast %422 : vector<8x32xf32> to vector<1x8x32xf32>
    tpu.vector_store %arg9[%c1_128, %c0_129, %c0_130], %427 {strides = array<i32>} : memref<2x8x32xf32, #tpu.memory_space<vmem>>, vector<1x8x32xf32>,
    %c1_131 = arith.constant 1 : index
    %c0_132 = arith.constant 0 : index
    %c0_133 = arith.constant 0 : index
    %428 = vector.load %arg10[%c1_131, %c0_132, %c0_133] : memref<2x8x32xf32, #tpu.memory_space<vmem>>, vector<1x8x32xf32>
    %429 = vector.shape_cast %428 : vector<1x8x32xf32> to vector<8x32xf32>
    %430 = vector.shape_cast %420 : vector<8x32xf32> to vector<1x8x32xf32>
    tpu.vector_store %arg10[%c1_131, %c0_132, %c0_133], %430 {strides = array<i32>} : memref<2x8x32xf32, #tpu.memory_space<vmem>>, vector<1x8x32xf32>,
    return
  }
  func.func @transform_0(%arg0: i32) -> (i32, i32) {
    %c0_i32 = arith.constant 0 : i32
    %c0_i32_0 = arith.constant 0 : i32
    return %arg0, %c0_i32 : i32, i32
  }
  func.func @transform_1(%arg0: i32) -> (i32, i32) {
    %c0_i32 = arith.constant 0 : i32
    %c0_i32_0 = arith.constant 0 : i32
    %c0_i32_1 = arith.constant 0 : i32
    return %c0_i32, %c0_i32_0 : i32, i32
  }
  func.func @transform_2(%arg0: i32) -> (i32, i32) {
    %c0_i32 = arith.constant 0 : i32
    %c0_i32_0 = arith.constant 0 : i32
    %c0_i32_1 = arith.constant 0 : i32
    return %c0_i32, %c0_i32_0 : i32, i32
  }
  func.func @transform_3(%arg0: i32) -> (i32, i32) {
    %c0_i32 = arith.constant 0 : i32
    %c0_i32_0 = arith.constant 0 : i32
    %c0_i32_1 = arith.constant 0 : i32
    return %c0_i32, %c0_i32_0 : i32, i32
  }
  func.func @transform_4(%arg0: i32) -> (i32, i32) {
    %c0_i32 = arith.constant 0 : i32
    %c0_i32_0 = arith.constant 0 : i32
    %c0_i32_1 = arith.constant 0 : i32
    return %c0_i32, %c0_i32_0 : i32, i32
  }
  func.func @transform_5(%arg0: i32) -> (i32, i32) {
    %c0_i32 = arith.constant 0 : i32
    %c0_i32_0 = arith.constant 0 : i32
    %c0_i32_1 = arith.constant 0 : i32
    return %c0_i32, %c0_i32_0 : i32, i32
  }
  func.func @transform_6(%arg0: i32) -> (i32, i32) {
    %c0_i32 = arith.constant 0 : i32
    %c0_i32_0 = arith.constant 0 : i32
    %c0_i32_1 = arith.constant 0 : i32
    return %c0_i32, %c0_i32_0 : i32, i32
  }
  func.func @transform_7(%arg0: i32) -> (i32, i32) {
    %c0_i32 = arith.constant 0 : i32
    %c0_i32_0 = arith.constant 0 : i32
    return %arg0, %c0_i32 : i32, i32
  }
  func.func @transform_8(%arg0: i32) -> (i32, i32, i32) {
    %c0_i32 = arith.constant 0 : i32
    %c0_i32_0 = arith.constant 0 : i32
    %c0_i32_1 = arith.constant 0 : i32
    %c0_i32_2 = arith.constant 0 : i32
    return %c0_i32, %c0_i32_0, %c0_i32_1 : i32, i32, i32
  }
  func.func @transform_9(%arg0: i32) -> (i32, i32, i32) {
    %c0_i32 = arith.constant 0 : i32
    %c0_i32_0 = arith.constant 0 : i32
    %c0_i32_1 = arith.constant 0 : i32
    %c0_i32_2 = arith.constant 0 : i32
    return %c0_i32, %c0_i32_0, %c0_i32_1 : i32, i32, i32
  }
}

</mosaic_0001>

<bundles_post_ra>
// kernel: encoder_lstm_forward.1
= control target key start
LH: loop header
LB: loop body
LE: loop exit
PB: predicated region body
PF: predicated region fallthrough
CT: control target
= control target key end

     0   :  { %vm34_vm0 = vcmask 261120   ;;  %v2011_v1 = vmov 0.0   ;;  %vm2012_vm1 = vmmov 0   ;;  %s2013_s10 = smov 32   ;;  %s2014_s12 = smov 64   ;;  %vm273_vm2 = vcmask 257024   ;;  %s2515_s1 = inlined_call_operand.vmem [shape: bf16[32,128], index: 1, kind: input, shape index: {}]   ;;  %s2516_s2 = inlined_call_operand.vmem [shape: bf16[32,128], index: 2, kind: input, shape index: {}]   ;;  %s2517_s8 = inlined_call_operand.vmem [shape: f32[2,8,32], index: 8, kind: output, shape index: {1}]   ;;  %s2518_s0 = inlined_call_operand.vmem [shape: bf16[64,32], index: 0, kind: input, shape index: {}]   ;;  %s2519_s9 = inlined_call_operand.vmem [shape: f32[2,8,32], index: 9, kind: output, shape index: {2}]   ;;  %s2520_s3 = inlined_call_operand.vmem [shape: f32[1,128], index: 3, kind: input, shape index: {}]   ;;  %s2521_s4 = inlined_call_operand.vmem [shape: bf16[32,128], index: 4, kind: input, shape index: {}]   ;;  %s2522_s5 = inlined_call_operand.vmem [shape: bf16[32,128], index: 5, kind: input, shape index: {}]   ;;  %s2523_s6 = inlined_call_operand.vmem [shape: f32[1,128], index: 6, kind: input, shape index: {}]   ;;  %s2524_s7 = inlined_call_operand.vmem [shape: f32[64,32], index: 7, kind: output, shape index: {0}]  }
   0x1   :  { %v1871_v0 = vld [vmem:[%s2515_s1] sm:$0xff]   ;;  %1726 = vmatprep.subr.bf16.mxu1 %v2011_v1  ;;  %1730 = vmatprep.mubr.msk.bf16.mxu1 %vm2012_vm1, %v2011_v1  ;;  %35 = vst.msk [vmem:[%s2517_s8] sm:$0xff] %vm34_vm0, %v2011_v1  ;;  %36 = vst.msk [vmem:[%s2517_s8 + $0x8] sm:$0xff] %vm34_vm0, %v2011_v1  ;;  %v1873_v3 = vld [vmem:[%s2515_s1 + $0x8] sm:$0xff]   ;;  %vm350_vm3 = vcmask 261124  }
   0x2   :  { %v2085_v2 = vld [vmem:[%s2516_s2] sm:$0xff]   ;;  %1714 = vmatprep.subr.bf16.mxu0 %v1871_v0  ;;  %v2094_v4 = vld [vmem:[%s2516_s2 + $0x8] sm:$0xff]   ;;  %37 = vst.msk [vmem:[%s2519_s9] sm:$0xff] %vm34_vm0, %v2011_v1  ;;  %38 = vst.msk [vmem:[%s2519_s9 + $0x8] sm:$0xff] %vm34_vm0, %v2011_v1 }
   0x3   :  { %1715 = vmatpush3.bf16.msra.mxu0 %v1871_v0  ;;  %1727 = vmatpush3.bf16.msra.mxu1 %v2085_v2  ;;  %v1875_v5 = vld [vmem:[%s2518_s0] sm:$0xff]   ;;  %v1876_v6 = vld [vmem:[%s2518_s0 + $0x8] sm:$0xff]   ;;  %v1877_v53 = vld [vmem:[%s2518_s0 + $0x10] sm:$0xff]  }
   0x4   :  { %1716 = vmatprep.subr.bf16.mxu0 %v1873_v3  ;;  %1728 = vmatprep.subr.bf16.mxu1 %v2011_v1  ;;  %v2135_v9 = vld [vmem:[%s2520_s3] ss:$0 sm:$0xff]  ;;  %v1878_v54 = vld [vmem:[%s2518_s0 + $0x18] sm:$0xff]  }
   0x5   :  { %1718 = vmatprep.mubr.msk.bf16.mxu0 %vm34_vm0, %v1875_v5 }
   0x7   :  { %1717 = vmatpush3.bf16.msra.mxu0 %v1873_v3  ;;  %1729 = vmatpush3.bf16.msra.mxu1 %v2094_v4 }
   0x8   :  { %v180_v7 = vld [vmem:[%s2517_s8] sm:$0xff]  ;;  %1734 = vmatprep.subr.bf16.mxu1 %v2011_v1  ;;  %1742 = vmatprep.subr.bf16.mxu0 %v2011_v1 }
   0x9   :  { %v183_v8 = vpack.c.bf16 %v180_v7, %v180_v7  ;;  %v181_v21 = vld [vmem:[%s2519_s9] sm:$0xff] }
   0xa   :  { %1719 = vmatmul.mubr.msk.bf16.vlgmr.msra.gmra.mrb[0].mxu0 %vm34_vm0, %v1876_v6 }
   0xb   :  { %1731 = vmatmul.mubr.msk.bf16.vlgmr.msra.gmra.mrb[0].mxu1 %vm34_vm0, %v183_v8  ;;  %1743 = vmatpush3.bf16.msra.mxu0 %v2085_v2 }
   0xc   :  { %1735 = vmatpush3.bf16.msra.mxu1 %v2085_v2  ;;  %1738 = vmatprep.mubr.msk.bf16.mxu1 %vm2012_vm1, %v2011_v1 }
   0xd   :  { %1736 = vmatprep.subr.bf16.mxu1 %v2011_v1  ;;  %1744 = vmatprep.subr.bf16.mxu0 %v2011_v1 }
   0xe   :  { %1722 = vmatprep.mubr.msk.bf16.mxu0 %vm34_vm0, %v1877_v53 }
   0xf   :  { %1745 = vmatpush3.bf16.msra.mxu0 %v2094_v4 }
  0x10   :  { %1737 = vmatpush3.bf16.msra.mxu1 %v2094_v4  ;;  %1758 = vmatprep.subr.bf16.mxu0 %v2011_v1 }
  0x11   :  { %1750 = vmatprep.subr.bf16.mxu1 %v2011_v1 }
  0x12   :  { %1723 = vmatmul.mubr.msk.bf16.gmra.mrb[4].mxu0 %vm34_vm0, %v1878_v54 }
  0x13   :  { %1746 = vmatprep.mubr.msk.bf16.mxu0 %vm2012_vm1, %v2011_v1 }
  0xdd   :  { %v2137_v10 = vpop.f32.mrb[0].mxu0 }
  0xde   :  { %v233_v11 = vpop.f32.mrb[0].mxu1  ;;  %v141_v12 = vpop.f32.mrb[1].mxu0  ;;  %v150_v0 = vadd.f32 %v2137_v10, %v2135_v9 }
  0xdf   :  { %v1732_v13 = vpop.f32.mrb[1].mxu1  ;;  %v142_v14 = vadd.f32 %v2135_v9, %v141_v12  ;;  %v2140_v15 = vpop.f32.mrb[2].mxu0 }
  0xe0   :  { %v236_v16 = vpop.f32.mrb[2].mxu1  ;;  %v144_v17 = vpop.f32.mrb[3].mxu0 }
  0xe1   :  { %v1733_v18 = vpop.f32.mrb[3].mxu1  ;;  %v239_v19 = vadd.f32 %v233_v11, %v142_v14  ;;  %v145_v37 = vadd.f32 %v2135_v9, %v144_v17 }
  0xe3   :  { %1883 = vtanh.f32 %v239_v19  ;;  %v1610_v22 = vmul.f32 -1.442695, %v239_v19 }
  0xe5   :  { %1885 = vpow2.f32 %v1610_v22  ;;  %v2176_v59 = vpop.f32.mrb[4].mxu0 }
  0xe6   :  { %v2178_v60 = vpop.f32.mrb[5].mxu0 }
  0xe7   :  { %v2180_v61 = vpop.f32.mrb[6].mxu0 }
  0xe8   :  { %v2182_v62 = vpop.f32.mrb[7].mxu0 }
  0xed   :  { %v1884_v20 = vpop.eup %1883 }
  0xee   :  { %253 = vrot.lane.b32.xlu0 %v1884_v20, %s2013_s10 }
  0xef   :  { %v1886_v23 = vpop.eup %1885 }
  0xf0   :  { %v243_v24 = vadd.f32 1.0, %v1886_v23 }
  0xf2   :  { %248 = vrot.lane.b32.xlu0 %v181_v21, %s2013_s10  ;;  %1887 = vrcp.f32 %v243_v24 }
  0xfc   :  { %v1888_v25 = vpop.eup %1887 }
 0x160   :  { %v254_v26 = vpop.permute.xlu0 %253 }
 0x161   :  { %v256_v27 = vmul.f32 %v1888_v25, %v254_v26  ;;  %v153_v26 = vadd.f32 %v2140_v15, %v2135_v9 }
 0x163   :  { %258 = vrot.lane.b32.xlu1 %v256_v27, %s2013_s10 }
 0x164   :  { %v249_v28 = vpop.permute.xlu0 %248 }
 0x165   :  { %v251_v29 = vmul.f32 %v1888_v25, %v249_v28 }
 0x1d5   :  { %v259_v30 = vpop.permute.xlu1 %258 }
 0x1d6   :  { %v261_v31 = vadd.f32 %v259_v30, %v251_v29 }
 0x1d8   :  { %1889 = vtanh.f32 %v261_v31 }
 0x1e2   :  { %v1890_v32 = vpop.eup %1889 }
 0x1e3   :  { %264 = vrot.lane.b32.xlu1 %v1890_v32, %s2013_s10 }
 0x255   :  { %v265_v33 = vpop.permute.xlu1 %264 }
 0x256   :  { %v267_v34 = vmul.f32 %v1888_v25, %v265_v33 }
 0x258   :  { %v268_v35 = vpack.c.bf16 %v267_v34, %v267_v34 }
 0x25a   :  { %270 = vrot.lane.b32.xlu0 %v268_v35, %s2014_s12 }
 0x2cc   :  { %v271_v36 = vpop.permute.xlu0 %270 }
 0x2cd   :  { %274 = vst.msk [vmem:[#allocation3] sm:$0xf] %vm273_vm2, %v271_v36  ;;  %1739 = vmatmul.mubr.msk.bf16.vlgmr.msra.gmra.mrb[4].mxu1 %vm34_vm0, %v271_v36 }
 0x2ce   :  { %1751 = vmatpush3.bf16.msra.mxu1 %v2085_v2  ;;  %1754 = vmatprep.mubr.msk.bf16.mxu1 %vm2012_vm1, %v2011_v1 }
 0x2cf   :  { %1752 = vmatprep.subr.bf16.mxu1 %v2011_v1 }
 0x2d2   :  { %1753 = vmatpush3.bf16.msra.mxu1 %v2094_v4 }
 0x2d3   :  { %1766 = vmatprep.subr.bf16.mxu1 %v2011_v1 }
 0x3a0   :  { %v313_v38 = vpop.f32.mrb[4].mxu1 }
 0x3a1   :  { %v319_v39 = vadd.f32 %v313_v38, %v145_v37  ;;  %v1740_v40 = vpop.f32.mrb[5].mxu1 }
 0x3a2   :  { %v316_v41 = vpop.f32.mrb[6].mxu1 }
 0x3a3   :  { %1891 = vtanh.f32 %v319_v39  ;;  %v1741_v42 = vpop.f32.mrb[7].mxu1  ;;  %v1612_v44 = vmul.f32 -1.442695, %v319_v39 }
 0x3a5   :  { %1893 = vpow2.f32 %v1612_v44 }
 0x3ad   :  { %v1892_v43 = vpop.eup %1891 }
 0x3ae   :  { %329 = vrot.lane.b32.xlu1 %v1892_v43, %s2013_s10 }
 0x3af   :  { %v1894_v45 = vpop.eup %1893 }
 0x3b0   :  { %v323_v46 = vadd.f32 1.0, %v1894_v45 }
 0x3b2   :  { %1895 = vrcp.f32 %v323_v46  ;;  %v158_v46 = vadd.f32 %v2135_v9, %v2178_v60 }
 0x3bc   :  { %v1896_v47 = vpop.eup %1895 }
 0x3bd   :  { %v327_v50 = vmul.f32 %v1896_v47, %v261_v31 }
 0x420   :  { %v330_v48 = vpop.permute.xlu1 %329 }
 0x421   :  { %v332_v49 = vmul.f32 %v1896_v47, %v330_v48 }
 0x423   :  { %334 = vrot.lane.b32.xlu0 %v332_v49, %s2013_s10 }
 0x495   :  { %v335_v51 = vpop.permute.xlu0 %334 }
 0x496   :  { %v337_v52 = vadd.f32 %v335_v51, %v327_v50 }
 0x498   :  { %1897 = vtanh.f32 %v337_v52 }
 0x4a2   :  { %v1898_v55 = vpop.eup %1897 }
 0x4a3   :  { %340 = vrot.lane.b32.xlu1 %v1898_v55, %s2013_s10 }
 0x515   :  { %v341_v56 = vpop.permute.xlu1 %340 }
 0x516   :  { %v343_v57 = vmul.f32 %v1896_v47, %v341_v56 }
 0x518   :  { %v2172_v58 = vpack.c.bf16 %v343_v57, %v343_v57 }
 0x51a   :  { %353 = vrot.lane.b32.xlu0 %v2172_v58, %s2014_s12 }
 0x58c   :  { %v354_v63 = vpop.permute.xlu0 %353 }
 0x58d   :  { %1747 = vmatmul.mubr.msk.bf16.vlgmr.msra.gmra.mrb[8].mxu0 %vm34_vm0, %v354_v63 }
 0x58e   :  { %1759 = vmatpush3.bf16.msra.mxu0 %v2085_v2  ;;  %1762 = vmatprep.mubr.msk.bf16.mxu0 %vm2012_vm1, %v2011_v1 }
 0x58f   :  { %1760 = vmatprep.subr.bf16.mxu0 %v2011_v1 }
 0x592   :  { %1761 = vmatpush3.bf16.msra.mxu0 %v2094_v4 }
 0x593   :  { %1774 = vmatprep.subr.bf16.mxu0 %v2011_v1 }
 0x660   :  { %v392_v3 = vpop.f32.mrb[8].mxu0 }
 0x661   :  { %v398_v5 = vadd.f32 %v392_v3, %v150_v0  ;;  %v1748_v6 = vpop.f32.mrb[9].mxu0 }
 0x662   :  { %v395_v7 = vpop.f32.mrb[10].mxu0 }
 0x663   :  { %1899 = vtanh.f32 %v398_v5  ;;  %v1749_v8 = vpop.f32.mrb[11].mxu0  ;;  %v1614_v12 = vmul.f32 -1.442695, %v398_v5 }
 0x665   :  { %1901 = vpow2.f32 %v1614_v12  ;;  %v161_v12 = vadd.f32 %v2135_v9, %v2182_v62 }
 0x66d   :  { %v1900_v11 = vpop.eup %1899 }
 0x66e   :  { %408 = vrot.lane.b32.xlu1 %v1900_v11, %s2013_s10 }
 0x66f   :  { %v1902_v13 = vpop.eup %1901 }
 0x670   :  { %v402_v14 = vadd.f32 1.0, %v1902_v13 }
 0x672   :  { %1903 = vrcp.f32 %v402_v14 }
 0x67c   :  { %v1904_v16 = vpop.eup %1903 }
 0x67d   :  { %v406_v10 = vmul.f32 %v1904_v16, %v337_v52 }
 0x6e0   :  { %v409_v17 = vpop.permute.xlu1 %408 }
 0x6e1   :  { %v411_v18 = vmul.f32 %v1904_v16, %v409_v17 }
 0x6e3   :  { %413 = vrot.lane.b32.xlu0 %v411_v18, %s2013_s10 }
 0x755   :  { %v414_v19 = vpop.permute.xlu0 %413 }
 0x756   :  { %v416_v20 = vadd.f32 %v414_v19, %v406_v10 }
 0x758   :  { %1905 = vtanh.f32 %v416_v20 }
 0x762   :  { %v1906_v21 = vpop.eup %1905 }
 0x763   :  { %419 = vrot.lane.b32.xlu1 %v1906_v21, %s2013_s10 }
 0x7d5   :  { %v420_v22 = vpop.permute.xlu1 %419 }
 0x7d6   :  { %v422_v23 = vmul.f32 %v1904_v16, %v420_v22 }
 0x7d8   :  { %v423_v24 = vpack.c.bf16 %v422_v23, %v422_v23 }
 0x7da   :  { %425 = vrot.lane.b32.xlu0 %v423_v24, %s2014_s12 }
 0x84c   :  { %v426_v25 = vpop.permute.xlu0 %425 }
 0x84d   :  { %428 = vst.msk [vmem:[#allocation3 + $0x8] sm:$0xf] %vm273_vm2, %v426_v25  ;;  %1755 = vmatmul.mubr.msk.bf16.vlgmr.msra.gmra.mrb[8].mxu1 %vm34_vm0, %v426_v25 }
 0x84e   :  { %1767 = vmatpush3.bf16.msra.mxu1 %v2085_v2  ;;  %1770 = vmatprep.mubr.msk.bf16.mxu1 %vm2012_vm1, %v2011_v1 }
 0x84f   :  { %1768 = vmatprep.subr.bf16.mxu1 %v2011_v1 }
 0x852   :  { %1769 = vmatpush3.bf16.msra.mxu1 %v2094_v4 }
 0x853   :  { %1782 = vmatprep.subr.bf16.mxu1 %v2011_v1 }
 0x920   :  { %v467_v27 = vpop.f32.mrb[8].mxu1 }
 0x921   :  { %v473_v28 = vadd.f32 %v467_v27, %v153_v26  ;;  %v1756_v29 = vpop.f32.mrb[9].mxu1 }
 0x922   :  { %v470_v30 = vpop.f32.mrb[10].mxu1 }
 0x923   :  { %1907 = vtanh.f32 %v473_v28  ;;  %v1757_v31 = vpop.f32.mrb[11].mxu1  ;;  %v1616_v33 = vmul.f32 -1.442695, %v473_v28  ;;  %v166_v30 = vadd.f32 %v2176_v59, %v2135_v9  ;;  %v346_v59 = vrot.slane %v2172_v58, 4  ;;  %v1880_v58 = vld [vmem:[%s2521_s4 + $0x8] sm:$0xff]  }
 0x925   :  { %1909 = vpow2.f32 %v1616_v33 }
 0x92d   :  { %v1908_v32 = vpop.eup %1907 }
 0x92e   :  { %483 = vrot.lane.b32.xlu1 %v1908_v32, %s2013_s10 }
 0x92f   :  { %v1910_v34 = vpop.eup %1909 }
 0x930   :  { %v477_v35 = vadd.f32 1.0, %v1910_v34 }
 0x932   :  { %1911 = vrcp.f32 %v477_v35 }
 0x93c   :  { %v1912_v36 = vpop.eup %1911 }
 0x93d   :  { %v481_v15 = vmul.f32 %v1912_v36, %v416_v20 }
 0x9a0   :  { %v484_v37 = vpop.permute.xlu1 %483 }
 0x9a1   :  { %v486_v38 = vmul.f32 %v1912_v36, %v484_v37 }
 0x9a3   :  { %488 = vrot.lane.b32.xlu0 %v486_v38, %s2013_s10 }
 0xa15   :  { %v489_v39 = vpop.permute.xlu0 %488 }
 0xa16   :  { %v491_v40 = vadd.f32 %v489_v39, %v481_v15 }
 0xa18   :  { %1913 = vtanh.f32 %v491_v40 }
 0xa22   :  { %v1914_v41 = vpop.eup %1913 }
 0xa23   :  { %494 = vrot.lane.b32.xlu1 %v1914_v41, %s2013_s10 }
 0xa95   :  { %v495_v42 = vpop.permute.xlu1 %494 }
 0xa96   :  { %v497_v43 = vmul.f32 %v1912_v36, %v495_v42 }
 0xa98   :  { %v2210_v44 = vpack.c.bf16 %v497_v43, %v497_v43 }
 0xa9a   :  { %506 = vrot.lane.b32.xlu0 %v2210_v44, %s2014_s12 }
 0xb0c   :  { %v507_v45 = vpop.permute.xlu0 %506 }
 0xb0d   :  { %1763 = vmatmul.mubr.msk.bf16.vlgmr.msra.gmra.mrb[12].mxu0 %vm34_vm0, %v507_v45 }
 0xb0e   :  { %1775 = vmatpush3.bf16.msra.mxu0 %v2085_v2  ;;  %1778 = vmatprep.mubr.msk.bf16.mxu0 %vm2012_vm1, %v2011_v1 }
 0xb0f   :  { %1776 = vmatprep.subr.bf16.mxu0 %v2011_v1 }
 0xb12   :  { %1777 = vmatpush3.bf16.msra.mxu0 %v2094_v4 }
 0xbe0   :  { %v545_v47 = vpop.f32.mrb[12].mxu0 }
 0xbe1   :  { %v551_v48 = vadd.f32 %v545_v47, %v158_v46  ;;  %v1764_v49 = vpop.f32.mrb[13].mxu0  ;;  %v1879_v46 = vld [vmem:[%s2521_s4] sm:$0xff]  }
 0xbe2   :  { %v548_v50 = vpop.f32.mrb[14].mxu0  ;;  %1790 = vmatprep.subr.bf16.mxu0 %v1879_v46 }
 0xbe3   :  { %1915 = vtanh.f32 %v551_v48  ;;  %v1765_v51 = vpop.f32.mrb[15].mxu0  ;;  %v1618_v53 = vmul.f32 -1.442695, %v551_v48  ;;  %v500_v50 = vrot.slane %v2210_v44, 4  ;;  %v2278_v44 = vld [vmem:[%s2522_s5 + $0x8] sm:$0xff]  }
 0xbe5   :  { %1917 = vpow2.f32 %v1618_v53 }
 0xbed   :  { %v1916_v52 = vpop.eup %1915 }
 0xbee   :  { %561 = vrot.lane.b32.xlu1 %v1916_v52, %s2013_s10 }
 0xbef   :  { %v1918_v54 = vpop.eup %1917 }
 0xbf0   :  { %v555_v55 = vadd.f32 1.0, %v1918_v54 }
 0xbf2   :  { %1919 = vrcp.f32 %v555_v55 }
 0xbfc   :  { %v1920_v56 = vpop.eup %1919 }
 0xbfd   :  { %v559_v60 = vmul.f32 %v1920_v56, %v491_v40 }
 0xc60   :  { %v562_v57 = vpop.permute.xlu1 %561 }
 0xc61   :  { %v564_v63 = vmul.f32 %v1920_v56, %v562_v57  ;;  %v1633_v57 = vld [vmem:[%s2519_s9 + $0x8] sm:$0xff] }
 0xc63   :  { %566 = vrot.lane.b32.xlu0 %v564_v63, %s2013_s10 }
 0xcd5   :  { %v567_v0 = vpop.permute.xlu0 %566 }
 0xcd6   :  { %v569_v3 = vadd.f32 %v567_v0, %v559_v60  ;;  %v1632_v60 = vld [vmem:[%s2517_s8 + $0x8] sm:$0xff] }
 0xcd7   :  { %v942_v0 = vpack.c.bf16 %v1632_v60, %v1632_v60 }
 0xcd8   :  { %1921 = vtanh.f32 %v569_v3 }
 0xce2   :  { %v1922_v5 = vpop.eup %1921 }
 0xce3   :  { %572 = vrot.lane.b32.xlu1 %v1922_v5, %s2013_s10 }
 0xd55   :  { %v573_v6 = vpop.permute.xlu1 %572 }
 0xd56   :  { %v575_v7 = vmul.f32 %v1920_v56, %v573_v6  ;;  %v2270_v56 = vld [vmem:[%s2522_s5] sm:$0xff]  }
 0xd58   :  { %v576_v8 = vpack.c.bf16 %v575_v7, %v575_v7 }
 0xd5a   :  { %578 = vrot.lane.b32.xlu0 %v576_v8, %s2014_s12  ;;  %v169_v8 = vadd.f32 %v2180_v61, %v2135_v9 }
 0xdcc   :  { %v579_v11 = vpop.permute.xlu0 %578 }
 0xdcd   :  { %581 = vst.msk [vmem:[#allocation3 + $0x10] sm:$0xf] %vm273_vm2, %v579_v11  ;;  %1771 = vmatmul.mubr.msk.bf16.vlgmr.msra.gmra.mrb[12].mxu1 %vm34_vm0, %v579_v11 }
 0xdce   :  { %1783 = vmatpush3.bf16.msra.mxu1 %v2085_v2  ;;  %1786 = vmatprep.mubr.msk.bf16.mxu1 %vm2012_vm1, %v2011_v1 }
 0xdcf   :  { %1784 = vmatprep.subr.bf16.mxu1 %v2011_v1 }
 0xdd2   :  { %1785 = vmatpush3.bf16.msra.mxu1 %v2094_v4 }
 0xdd3   :  { %1802 = vmatprep.subr.bf16.mxu1 %v2011_v1 }
 0xea0   :  { %v620_v13 = vpop.f32.mrb[12].mxu1 }
 0xea1   :  { %v626_v14 = vadd.f32 %v620_v13, %v161_v12  ;;  %v1772_v16 = vpop.f32.mrb[13].mxu1 }
 0xea2   :  { %v623_v17 = vpop.f32.mrb[14].mxu1 }
 0xea3   :  { %1923 = vtanh.f32 %v626_v14  ;;  %v1773_v18 = vpop.f32.mrb[15].mxu1  ;;  %v1620_v2 = vmul.f32 -1.442695, %v626_v14  ;;  %v2315_v17 = vld [vmem:[%s2523_s6] ss:$0 sm:$0xff]  ;;  %s2015_s6 = smov 96  }
 0xea5   :  { %1925 = vpow2.f32 %v1620_v2 }
 0xead   :  { %v1924_v10 = vpop.eup %1923 }
 0xeae   :  { %636 = vrot.lane.b32.xlu1 %v1924_v10, %s2013_s10 }
 0xeaf   :  { %v1926_v19 = vpop.eup %1925 }
 0xeb0   :  { %v630_v20 = vadd.f32 1.0, %v1926_v19 }
 0xeb2   :  { %1927 = vrcp.f32 %v630_v20 }
 0xebc   :  { %v1928_v4 = vpop.eup %1927 }
 0xebd   :  { %v634_v62 = vmul.f32 %v1928_v4, %v569_v3 }
 0xf20   :  { %v637_v21 = vpop.permute.xlu1 %636 }
 0xf21   :  { %v639_v22 = vmul.f32 %v1928_v4, %v637_v21 }
 0xf23   :  { %641 = vrot.lane.b32.xlu0 %v639_v22, %s2013_s10 }
 0xf95   :  { %v642_v23 = vpop.permute.xlu0 %641 }
 0xf96   :  { %v644_v24 = vadd.f32 %v642_v23, %v634_v62 }
 0xf98   :  { %1929 = vtanh.f32 %v644_v24 }
 0xfa2   :  { %v1930_v25 = vpop.eup %1929 }
 0xfa3   :  { %647 = vrot.lane.b32.xlu1 %v1930_v25, %s2013_s10 }
0x1015   :  { %v648_v26 = vpop.permute.xlu1 %647 }
0x1016   :  { %v650_v27 = vmul.f32 %v1928_v4, %v648_v26 }
0x1018   :  { %v2239_v28 = vpack.c.bf16 %v650_v27, %v650_v27 }
0x101a   :  { %659 = vrot.lane.b32.xlu0 %v2239_v28, %s2014_s12 }
0x108c   :  { %v660_v29 = vpop.permute.xlu0 %659 }
0x108d   :  { %1779 = vmatmul.mubr.msk.bf16.vlgmr.msra.gmra.mrb[16].mxu0 %vm34_vm0, %v660_v29 }
0x108e   :  { %1791 = vmatpush3.bf16.msra.mxu0 %v1879_v46 }
0x108f   :  { %1792 = vmatprep.subr.bf16.mxu0 %v1880_v58 }
0x1092   :  { %1793 = vmatpush3.bf16.msra.mxu0 %v1880_v58 }
0x1093   :  { %1818 = vmatprep.subr.bf16.mxu0 %v2011_v1 }
0x1160   :  { %v698_v31 = vpop.f32.mrb[16].mxu0 }
0x1161   :  { %v704_v32 = vadd.f32 %v698_v31, %v166_v30  ;;  %v1780_v33 = vpop.f32.mrb[17].mxu0 }
0x1162   :  { %v701_v34 = vpop.f32.mrb[18].mxu0 }
0x1163   :  { %1931 = vtanh.f32 %v704_v32  ;;  %v1781_v35 = vpop.f32.mrb[19].mxu0  ;;  %v1622_v37 = vmul.f32 -1.442695, %v704_v32 }
0x1165   :  { %1933 = vpow2.f32 %v1622_v37 }
0x116d   :  { %v1932_v36 = vpop.eup %1931 }
0x116e   :  { %714 = vrot.lane.b32.xlu1 %v1932_v36, %s2013_s10 }
0x116f   :  { %v1934_v38 = vpop.eup %1933 }
0x1170   :  { %v708_v15 = vadd.f32 1.0, %v1934_v38 }
0x1172   :  { %1935 = vrcp.f32 %v708_v15 }
0x117c   :  { %v1936_v39 = vpop.eup %1935 }
0x117d   :  { %v712_v42 = vmul.f32 %v1936_v39, %v644_v24 }
0x11e0   :  { %v715_v40 = vpop.permute.xlu1 %714 }
0x11e1   :  { %v717_v41 = vmul.f32 %v1936_v39, %v715_v40 }
0x11e3   :  { %719 = vrot.lane.b32.xlu0 %v717_v41, %s2013_s10 }
0x11e7   :  { %347 = vrot.lane.b32.xlu0 %v346_v59, %s2014_s12 }
0x1255   :  { %v720_v43 = vpop.permute.xlu0 %719 }
0x1256   :  { %v2250_v45 = vadd.f32 %v720_v43, %v712_v42 }
0x1258   :  { %1937 = vtanh.f32 %v2250_v45 }
0x1259   :  { %v348_v47 = vpop.permute.xlu0 %347 }
0x125a   :  { %351 = vst.msk [vmem:[#allocation3] sm:$0xf0] %vm350_vm3, %v348_v47 }
0x1261   :  { %v830_v48 = vld [vmem:[#allocation3] sm:$0xff] }
0x1262   :  { %v1938_v49 = vpop.eup %1937  ;;  %1794 = vmatprep.mubr.msk.bf16.mxu0 %vm34_vm0, %v830_v48 }
0x1263   :  { %725 = vrot.lane.b32.xlu1 %v1938_v49, %s2013_s10 }
0x1267   :  { %501 = vrot.lane.b32.xlu1 %v500_v50, %s2014_s12 }
0x12d5   :  { %v726_v51 = vpop.permute.xlu1 %725 }
0x12d6   :  { %v728_v52 = vmul.f32 %v1936_v39, %v726_v51 }
0x12d8   :  { %v729_v53 = vpack.c.bf16 %v728_v52, %v728_v52 }
0x12d9   :  { %v502_v54 = vpop.permute.xlu1 %501 }
0x12da   :  { %504 = vst.msk [vmem:[#allocation3 + $0x8] sm:$0xf0] %vm350_vm3, %v502_v54  ;;  %731 = vrot.lane.b32.xlu0 %v729_v53, %s2014_s12 }
0x12de   :  { %1007 = vrot.lane.b32.xlu0 %v1633_v57, %s2013_s10 }
0x12e1   :  { %v831_v55 = vld [vmem:[#allocation3 + $0x8] sm:$0xff] }
0x12e2   :  { %1795 = vmatmul.mubr.msk.bf16.vlgmr.msra.gmra.mrb[20].mxu0 %vm34_vm0, %v831_v55 }
0x12e3   :  { %1819 = vmatpush3.bf16.msra.mxu0 %v2270_v56 }
0x12e4   :  { %1820 = vmatprep.subr.bf16.mxu0 %v2011_v1 }
0x12e7   :  { %1821 = vmatpush3.bf16.msra.mxu0 %v2278_v44 }
0x12e8   :  { %1834 = vmatprep.subr.bf16.mxu0 %v2011_v1 }
0x134c   :  { %v732_v63 = vpop.permute.xlu0 %731 }
0x134d   :  { %734 = vst.msk [vmem:[#allocation3 + $0x18] sm:$0xf] %vm273_vm2, %v732_v63  ;;  %1787 = vmatmul.mubr.msk.bf16.vlgmr.msra.gmra.mrb[16].mxu1 %vm34_vm0, %v732_v63 }
0x134e   :  { %1803 = vmatpush3.bf16.msra.mxu1 %v2270_v56  ;;  %1806 = vmatprep.mubr.msk.bf16.mxu1 %vm2012_vm1, %v2011_v1 }
0x134f   :  { %1804 = vmatprep.subr.bf16.mxu1 %v2011_v1 }
0x1350   :  { %v1008_v25 = vpop.permute.xlu0 %1007 }
0x1352   :  { %1805 = vmatpush3.bf16.msra.mxu1 %v2278_v44 }
0x1353   :  { %1810 = vmatprep.subr.bf16.mxu1 %v2011_v1 }
0x1355   :  { %1807 = vmatmul.mubr.msk.bf16.vlgmr.msra.gmra.mrb[20].mxu1 %vm34_vm0, %v942_v0 }
0x1356   :  { %1811 = vmatpush3.bf16.msra.mxu1 %v2270_v56  ;;  %1814 = vmatprep.mubr.msk.bf16.mxu1 %vm2012_vm1, %v2011_v1 }
0x1357   :  { %1812 = vmatprep.subr.bf16.mxu1 %v2011_v1 }
0x135a   :  { %1813 = vmatpush3.bf16.msra.mxu1 %v2278_v44 }
0x135b   :  { %1826 = vmatprep.subr.bf16.mxu1 %v2011_v1 }
0x13b5   :  { %v2304_v3 = vpop.f32.mrb[20].mxu0 }
0x13b6   :  { %v898_v5 = vpop.f32.mrb[21].mxu0 }
0x13b7   :  { %v2306_v6 = vpop.f32.mrb[22].mxu0  ;;  %v899_v18 = vadd.f32 %v2315_v17, %v898_v5 }
0x13b8   :  { %v2308_v7 = vpop.f32.mrb[23].mxu0 }
0x13b9   :  { %v902_v48 = vadd.f32 %v2315_v17, %v2308_v7 }
0x1420   :  { %v773_v11 = vpop.f32.mrb[16].mxu1 }
0x1421   :  { %v779_v12 = vadd.f32 %v773_v11, %v169_v8  ;;  %v1788_v13 = vpop.f32.mrb[17].mxu1 }
0x1422   :  { %v776_v14 = vpop.f32.mrb[18].mxu1 }
0x1423   :  { %v1789_v16 = vpop.f32.mrb[19].mxu1  ;;  %v1624_v32 = vmul.f32 -1.442695, %v779_v12 }
0x1428   :  { %v992_v10 = vpop.f32.mrb[20].mxu1 }
0x1429   :  { %v998_v2 = vadd.f32 %v992_v10, %v899_v18  ;;  %v1808_v19 = vpop.f32.mrb[21].mxu1 }
0x142a   :  { %v995_v20 = vpop.f32.mrb[22].mxu1 }
0x142b   :  { %1939 = vtanh.f32 %v998_v2  ;;  %v1809_v4 = vpop.f32.mrb[23].mxu1  ;;  %v1637_v9 = vmul.f32 -1.442695, %v998_v2 }
0x142d   :  { %1941 = vpow2.f32 %v1637_v9 }
0x1435   :  { %v1940_v21 = vpop.eup %1939 }
0x1436   :  { %1012 = vrot.lane.b32.xlu1 %v1940_v21, %s2013_s10 }
0x1437   :  { %v1942_v61 = vpop.eup %1941 }
0x1438   :  { %v1002_v22 = vadd.f32 1.0, %v1942_v61 }
0x143a   :  { %1943 = vrcp.f32 %v1002_v22  ;;  %v907_v22 = vadd.f32 %v2304_v3, %v2315_v17 }
0x1444   :  { %v1944_v62 = vpop.eup %1943 }
0x1445   :  { %v1010_v26 = vmul.f32 %v1944_v62, %v1008_v25 }
0x14a8   :  { %v1013_v23 = vpop.permute.xlu1 %1012 }
0x14a9   :  { %v1015_v24 = vmul.f32 %v1944_v62, %v1013_v23 }
0x14ab   :  { %1017 = vrot.lane.b32.xlu1 %v1015_v24, %s2013_s10 }
0x151d   :  { %v1018_v27 = vpop.permute.xlu1 %1017 }
0x151e   :  { %v1020_v29 = vadd.f32 %v1018_v27, %v1010_v26 }
0x1520   :  { %1945 = vtanh.f32 %v1020_v29 }
0x1521   :  { %1947 = vtanh.f32 %v779_v12 }
0x1522   :  { %1949 = vpow2.f32 %v1624_v32 }
0x152a   :  { %v1946_v30 = vpop.eup %1945 }
0x152b   :  { %1023 = vrot.lane.b32.xlu0 %v1946_v30, %s2013_s10  ;;  %v1948_v31 = vpop.eup %1947 }
0x152c   :  { %v1950_v33 = vpop.eup %1949 }
0x152d   :  { %v783_v34 = vadd.f32 1.0, %v1950_v33 }
0x152f   :  { %789 = vrot.lane.b32.xlu0 %v1948_v31, %s2013_s10  ;;  %1951 = vrcp.f32 %v783_v34 }
0x1539   :  { %v1952_v38 = vpop.eup %1951 }
0x153a   :  { %v787_v41 = vmul.f32 %v1952_v38, %v2250_v45  ;;  %v653_v45 = vrot.slane %v2239_v28, 4 }
0x159d   :  { %v1024_v35 = vpop.permute.xlu0 %1023 }
0x159e   :  { %v2322_v36 = vmul.f32 %v1944_v62, %v1024_v35 }
0x15a0   :  { %v1033_v37 = vpack.c.bf16 %v2322_v36, %v2322_v36 }
0x15a1   :  { %v790_v15 = vpop.permute.xlu0 %789 }
0x15a2   :  { %v792_v39 = vmul.f32 %v1952_v38, %v790_v15  ;;  %1035 = vrot.lane.b32.xlu1 %v1033_v37, %s2014_s12 }
0x15a4   :  { %794 = vrot.lane.b32.xlu0 %v792_v39, %s2013_s10 }
0x1614   :  { %v1036_v40 = vpop.permute.xlu1 %1035 }
0x1615   :  { %1815 = vmatmul.mubr.msk.bf16.vlgmr.msra.gmra.mrb[24].mxu1 %vm34_vm0, %v1036_v40 }
0x1616   :  { %v795_v59 = vpop.permute.xlu0 %794  ;;  %1827 = vmatpush3.bf16.msra.mxu1 %v2270_v56  ;;  %1830 = vmatprep.mubr.msk.bf16.mxu1 %vm2012_vm1, %v2011_v1 }
0x1617   :  { %v2333_v42 = vadd.f32 %v795_v59, %v787_v41  ;;  %1828 = vmatprep.subr.bf16.mxu1 %v2011_v1  ;;  %v910_v59 = vadd.f32 %v2306_v6, %v2315_v17 }
0x1619   :  { %1953 = vtanh.f32 %v2333_v42 }
0x161a   :  { %1829 = vmatpush3.bf16.msra.mxu1 %v2278_v44 }
0x161b   :  { %1842 = vmatprep.subr.bf16.mxu1 %v2011_v1 }
0x1623   :  { %v1954_v43 = vpop.eup %1953 }
0x1624   :  { %800 = vrot.lane.b32.xlu0 %v1954_v43, %s2013_s10 }
0x1628   :  { %654 = vrot.lane.b32.xlu0 %v653_v45, %s2014_s12 }
0x1696   :  { %v801_v46 = vpop.permute.xlu0 %800 }
0x1697   :  { %v2348_v11 = vmul.f32 %v1952_v38, %v801_v46 }
0x1699   :  { %v804_v12 = vpack.c.bf16 %v2348_v11, %v2348_v11 }
0x169a   :  { %v655_v47 = vpop.permute.xlu0 %654 }
0x169b   :  { %657 = vst.msk [vmem:[#allocation3 + $0x10] sm:$0xf0] %vm350_vm3, %v655_v47  ;;  %v806_v14 = vrot.slane %v804_v12, 4 }
0x16a2   :  { %v832_v58 = vld [vmem:[#allocation3 + $0x10] sm:$0xff] }
0x16a3   :  { %1798 = vmatprep.mubr.msk.bf16.mxu0 %vm34_vm0, %v832_v58 }
0x16e8   :  { %v1074_v49 = vpop.f32.mrb[24].mxu1 }
0x16e9   :  { %v1080_v50 = vadd.f32 %v1074_v49, %v902_v48  ;;  %v1816_v51 = vpop.f32.mrb[25].mxu1 }
0x16ea   :  { %v1077_v52 = vpop.f32.mrb[26].mxu1 }
0x16eb   :  { %1955 = vtanh.f32 %v1080_v50  ;;  %v1817_v53 = vpop.f32.mrb[27].mxu1  ;;  %v1639_v28 = vmul.f32 -1.442695, %v1080_v50 }
0x16ed   :  { %1957 = vpow2.f32 %v1639_v28 }
0x16f5   :  { %v1956_v54 = vpop.eup %1955 }
0x16f6   :  { %1090 = vrot.lane.b32.xlu1 %v1956_v54, %s2013_s10 }
0x16f7   :  { %v1958_v55 = vpop.eup %1957 }
0x16f8   :  { %v1084_v57 = vadd.f32 1.0, %v1958_v55 }
0x16fa   :  { %1959 = vrcp.f32 %v1084_v57 }
0x1704   :  { %v1960_v63 = vpop.eup %1959 }
0x1705   :  { %v1088_v5 = vmul.f32 %v1960_v63, %v1020_v29 }
0x1768   :  { %v1091_v60 = vpop.permute.xlu1 %1090 }
0x1769   :  { %v1093_v0 = vmul.f32 %v1960_v63, %v1091_v60 }
0x176b   :  { %1095 = vrot.lane.b32.xlu1 %v1093_v0, %s2013_s10 }
0x17dd   :  { %v1096_v7 = vpop.permute.xlu1 %1095 }
0x17de   :  { %v1098_v8 = vadd.f32 %v1096_v7, %v1088_v5 }
0x17e0   :  { %1961 = vtanh.f32 %v1098_v8 }
0x17ea   :  { %v1962_v13 = vpop.eup %1961 }
0x17eb   :  { %1101 = vrot.lane.b32.xlu1 %v1962_v13, %s2013_s10 }
0x17ef   :  { %807 = vrot.lane.b32.xlu1 %v806_v14, %s2014_s12 }
0x185d   :  { %v1102_v16 = vpop.permute.xlu1 %1101 }
0x185e   :  { %v2354_v18 = vmul.f32 %v1960_v63, %v1102_v16 }
0x1860   :  { %v1111_v10 = vpack.c.bf16 %v2354_v18, %v2354_v18 }
0x1861   :  { %v808_v2 = vpop.permute.xlu1 %807 }
0x1862   :  { %810 = vst.msk [vmem:[#allocation3 + $0x18] sm:$0xf0] %vm350_vm3, %v808_v2  ;;  %1113 = vrot.lane.b32.xlu0 %v1111_v10, %s2014_s12 }
0x1869   :  { %v833_v19 = vld [vmem:[#allocation3 + $0x18] sm:$0xff] }
0x186a   :  { %1799 = vmatmul.mubr.msk.bf16.gmra.mrb[24].mxu0 %vm34_vm0, %v833_v19 }
0x186b   :  { %1822 = vmatprep.mubr.msk.bf16.mxu0 %vm2012_vm1, %v2011_v1 }
0x18d4   :  { %v1114_v20 = vpop.permute.xlu0 %1113 }
0x18d5   :  { %1823 = vmatmul.mubr.msk.bf16.vlgmr.msra.gmra.mrb[28].mxu0 %vm34_vm0, %v1114_v20 }
0x18d6   :  { %1835 = vmatpush3.bf16.msra.mxu0 %v2270_v56  ;;  %1838 = vmatprep.mubr.msk.bf16.mxu0 %vm2012_vm1, %v2011_v1 }
0x18d7   :  { %1836 = vmatprep.subr.bf16.mxu0 %v2011_v1 }
0x18da   :  { %1837 = vmatpush3.bf16.msra.mxu0 %v2278_v44 }
0x18db   :  { %1850 = vmatprep.subr.bf16.mxu0 %v2011_v1 }
0x193d   :  { %v2370_v4 = vpop.f32.mrb[24].mxu0 }
0x193e   :  { %v2372_v21 = vpop.f32.mrb[25].mxu0 }
0x193f   :  { %v2374_v9 = vpop.f32.mrb[26].mxu0  ;;  %v915_v7 = vadd.f32 %v2315_v17, %v2372_v21 }
0x1940   :  { %v2376_v61 = vpop.f32.mrb[27].mxu0 }
0x19a8   :  { %v1152_v62 = vpop.f32.mrb[28].mxu0 }
0x19a9   :  { %v1158_v23 = vadd.f32 %v1152_v62, %v907_v22  ;;  %v1824_v24 = vpop.f32.mrb[29].mxu0 }
0x19aa   :  { %v1155_v25 = vpop.f32.mrb[30].mxu0 }
0x19ab   :  { %1963 = vtanh.f32 %v1158_v23  ;;  %v1825_v26 = vpop.f32.mrb[31].mxu0  ;;  %v1641_v29 = vmul.f32 -1.442695, %v1158_v23 }
0x19ad   :  { %1965 = vpow2.f32 %v1641_v29 }
0x19b5   :  { %v1964_v27 = vpop.eup %1963 }
0x19b6   :  { %1168 = vrot.lane.b32.xlu1 %v1964_v27, %s2013_s10 }
0x19b7   :  { %v1966_v30 = vpop.eup %1965 }
0x19b8   :  { %v1162_v31 = vadd.f32 1.0, %v1966_v30 }
0x19ba   :  { %1967 = vrcp.f32 %v1162_v31 }
0x19c4   :  { %v1968_v32 = vpop.eup %1967 }
0x19c5   :  { %v1166_v3 = vmul.f32 %v1968_v32, %v1098_v8 }
0x1a28   :  { %v1169_v33 = vpop.permute.xlu1 %1168 }
0x1a29   :  { %v1171_v34 = vmul.f32 %v1968_v32, %v1169_v33 }
0x1a2b   :  { %1173 = vrot.lane.b32.xlu0 %v1171_v34, %s2013_s10 }
0x1a9d   :  { %v1174_v35 = vpop.permute.xlu0 %1173 }
0x1a9e   :  { %v1176_v37 = vadd.f32 %v1174_v35, %v1166_v3 }
0x1aa0   :  { %1969 = vtanh.f32 %v1176_v37 }
0x1aaa   :  { %v1970_v38 = vpop.eup %1969 }
0x1aab   :  { %1179 = vrot.lane.b32.xlu1 %v1970_v38, %s2013_s10 }
0x1b1d   :  { %v1180_v15 = vpop.permute.xlu1 %1179 }
0x1b1e   :  { %v2383_v39 = vmul.f32 %v1968_v32, %v1180_v15  ;;  %v918_v32 = vadd.f32 %v2315_v17, %v2376_v61 }
0x1b20   :  { %v1189_v40 = vpack.c.bf16 %v2383_v39, %v2383_v39 }
0x1b22   :  { %1191 = vrot.lane.b32.xlu0 %v1189_v40, %s2014_s12 }
0x1b94   :  { %v1192_v41 = vpop.permute.xlu0 %1191 }
0x1b95   :  { %1831 = vmatmul.mubr.msk.bf16.vlgmr.msra.gmra.mrb[28].mxu1 %vm34_vm0, %v1192_v41 }
0x1b96   :  { %1843 = vmatpush3.bf16.msra.mxu1 %v2270_v56  ;;  %1846 = vmatprep.mubr.msk.bf16.mxu1 %vm2012_vm1, %v2011_v1 }
0x1b97   :  { %1844 = vmatprep.subr.bf16.mxu1 %v2011_v1 }
0x1b9a   :  { %1845 = vmatpush3.bf16.msra.mxu1 %v2278_v44 }
0x1b9b   :  { %1858 = vmatprep.subr.bf16.mxu1 %v2011_v1 }
0x1c68   :  { %v1230_v43 = vpop.f32.mrb[28].mxu1 }
0x1c69   :  { %v1236_v45 = vadd.f32 %v1230_v43, %v910_v59  ;;  %v1832_v46 = vpop.f32.mrb[29].mxu1 }
0x1c6a   :  { %v1233_v47 = vpop.f32.mrb[30].mxu1 }
0x1c6b   :  { %1971 = vtanh.f32 %v1236_v45  ;;  %v1833_v58 = vpop.f32.mrb[31].mxu1  ;;  %v1643_v49 = vmul.f32 -1.442695, %v1236_v45 }
0x1c6d   :  { %1973 = vpow2.f32 %v1643_v49  ;;  %v923_v49 = vadd.f32 %v2370_v4, %v2315_v17 }
0x1c75   :  { %v1972_v48 = vpop.eup %1971 }
0x1c76   :  { %1246 = vrot.lane.b32.xlu1 %v1972_v48, %s2013_s10 }
0x1c77   :  { %v1974_v50 = vpop.eup %1973 }
0x1c78   :  { %v1240_v51 = vadd.f32 1.0, %v1974_v50 }
0x1c7a   :  { %1975 = vrcp.f32 %v1240_v51 }
0x1c84   :  { %v1976_v52 = vpop.eup %1975 }
0x1c85   :  { %v1244_v6 = vmul.f32 %v1976_v52, %v1176_v37 }
0x1ce8   :  { %v1247_v53 = vpop.permute.xlu1 %1246 }
0x1ce9   :  { %v1249_v54 = vmul.f32 %v1976_v52, %v1247_v53 }
0x1ceb   :  { %1251 = vrot.lane.b32.xlu0 %v1249_v54, %s2013_s10 }
0x1d5d   :  { %v1252_v28 = vpop.permute.xlu0 %1251 }
0x1d5e   :  { %v1254_v55 = vadd.f32 %v1252_v28, %v1244_v6 }
0x1d60   :  { %1977 = vtanh.f32 %v1254_v55 }
0x1d6a   :  { %v1978_v57 = vpop.eup %1977 }
0x1d6b   :  { %1257 = vrot.lane.b32.xlu1 %v1978_v57, %s2013_s10 }
0x1ddd   :  { %v1258_v63 = vpop.permute.xlu1 %1257 }
0x1dde   :  { %v2400_v60 = vmul.f32 %v1976_v52, %v1258_v63 }
0x1de0   :  { %v1267_v0 = vpack.c.bf16 %v2400_v60, %v2400_v60 }
0x1de2   :  { %1269 = vrot.lane.b32.xlu0 %v1267_v0, %s2014_s12 }
0x1e54   :  { %v1270_v5 = vpop.permute.xlu0 %1269 }
0x1e55   :  { %1839 = vmatmul.mubr.msk.bf16.vlgmr.msra.gmra.mrb[32].mxu0 %vm34_vm0, %v1270_v5 }
0x1e56   :  { %1851 = vmatpush3.bf16.msra.mxu0 %v2270_v56  ;;  %1854 = vmatprep.mubr.msk.bf16.mxu0 %vm2012_vm1, %v2011_v1 }
0x1e57   :  { %1852 = vmatprep.subr.bf16.mxu0 %v2011_v1 }
0x1e5a   :  { %1853 = vmatpush3.bf16.msra.mxu0 %v2278_v44 }
0x1f28   :  { %v1308_v8 = vpop.f32.mrb[32].mxu0 }
0x1f29   :  { %v1314_v12 = vadd.f32 %v1308_v8, %v915_v7  ;;  %v1840_v13 = vpop.f32.mrb[33].mxu0 }
0x1f2a   :  { %v1311_v14 = vpop.f32.mrb[34].mxu0 }
0x1f2b   :  { %1979 = vtanh.f32 %v1314_v12  ;;  %v1841_v16 = vpop.f32.mrb[35].mxu0  ;;  %v1645_v2 = vmul.f32 -1.442695, %v1314_v12 }
0x1f2d   :  { %1981 = vpow2.f32 %v1645_v2  ;;  %v926_v2 = vadd.f32 %v2374_v9, %v2315_v17 }
0x1f35   :  { %v1980_v10 = vpop.eup %1979 }
0x1f36   :  { %1324 = vrot.lane.b32.xlu1 %v1980_v10, %s2013_s10 }
0x1f37   :  { %v1982_v19 = vpop.eup %1981 }
0x1f38   :  { %v1318_v20 = vadd.f32 1.0, %v1982_v19 }
0x1f3a   :  { %1983 = vrcp.f32 %v1318_v20 }
0x1f44   :  { %v1984_v22 = vpop.eup %1983 }
0x1f45   :  { %v1322_v21 = vmul.f32 %v1984_v22, %v1254_v55 }
0x1fa8   :  { %v1325_v62 = vpop.permute.xlu1 %1324 }
0x1fa9   :  { %v1327_v23 = vmul.f32 %v1984_v22, %v1325_v62 }
0x1fab   :  { %1329 = vrot.lane.b32.xlu0 %v1327_v23, %s2013_s10 }
0x201d   :  { %v1330_v24 = vpop.permute.xlu0 %1329 }
0x201e   :  { %v1332_v25 = vadd.f32 %v1330_v24, %v1322_v21 }
0x2020   :  { %1985 = vtanh.f32 %v1332_v25 }
0x202a   :  { %v1986_v26 = vpop.eup %1985 }
0x202b   :  { %1335 = vrot.lane.b32.xlu1 %v1986_v26, %s2013_s10 }
0x209d   :  { %v1336_v27 = vpop.permute.xlu1 %1335 }
0x209e   :  { %v2416_v29 = vmul.f32 %v1984_v22, %v1336_v27 }
0x20a0   :  { %v1345_v30 = vpack.c.bf16 %v2416_v29, %v2416_v29 }
0x20a2   :  { %1347 = vrot.lane.b32.xlu0 %v1345_v30, %s2014_s12 }
0x2114   :  { %v1348_v31 = vpop.permute.xlu0 %1347 }
0x2115   :  { %1847 = vmatmul.mubr.msk.bf16.vlgmr.msra.gmra.mrb[32].mxu1 %vm34_vm0, %v1348_v31 }
0x2116   :  { %1859 = vmatpush3.bf16.msra.mxu1 %v2270_v56  ;;  %1862 = vmatprep.mubr.msk.bf16.mxu1 %vm2012_vm1, %v2011_v1 }
0x2117   :  { %1860 = vmatprep.subr.bf16.mxu1 %v2011_v1 }
0x211a   :  { %1861 = vmatpush3.bf16.msra.mxu1 %v2278_v44 }
0x21e8   :  { %v1386_v33 = vpop.f32.mrb[32].mxu1 }
0x21e9   :  { %v1392_v34 = vadd.f32 %v1386_v33, %v918_v32  ;;  %v1848_v3 = vpop.f32.mrb[33].mxu1 }
0x21ea   :  { %v1389_v35 = vpop.f32.mrb[34].mxu1 }
0x21eb   :  { %1987 = vtanh.f32 %v1392_v34  ;;  %v1849_v37 = vpop.f32.mrb[35].mxu1  ;;  %v1647_v56 = vmul.f32 -1.442695, %v1392_v34 }
0x21ed   :  { %1989 = vpow2.f32 %v1647_v56 }
0x21f5   :  { %v1988_v38 = vpop.eup %1987 }
0x21f6   :  { %1402 = vrot.lane.b32.xlu1 %v1988_v38, %s2013_s10 }
0x21f7   :  { %v1990_v15 = vpop.eup %1989 }
0x21f8   :  { %v1396_v40 = vadd.f32 1.0, %v1990_v15 }
0x21fa   :  { %1991 = vrcp.f32 %v1396_v40 }
0x2204   :  { %v1992_v1 = vpop.eup %1991 }
0x2205   :  { %v1400_v61 = vmul.f32 %v1992_v1, %v1332_v25 }
0x2268   :  { %v1403_v41 = vpop.permute.xlu1 %1402 }
0x2269   :  { %v1405_v44 = vmul.f32 %v1992_v1, %v1403_v41 }
0x226b   :  { %1407 = vrot.lane.b32.xlu0 %v1405_v44, %s2013_s10 }
0x22dd   :  { %v1408_v59 = vpop.permute.xlu0 %1407 }
0x22de   :  { %v1410_v43 = vadd.f32 %v1408_v59, %v1400_v61 }
0x22e0   :  { %1993 = vtanh.f32 %v1410_v43 }
0x22ea   :  { %v1994_v45 = vpop.eup %1993 }
0x22eb   :  { %1413 = vrot.lane.b32.xlu1 %v1994_v45, %s2013_s10 }
0x235d   :  { %v1414_v46 = vpop.permute.xlu1 %1413 }
0x235e   :  { %v2432_v47 = vmul.f32 %v1992_v1, %v1414_v46 }
0x2360   :  { %v1423_v58 = vpack.c.bf16 %v2432_v47, %v2432_v47 }
0x2362   :  { %1425 = vrot.lane.b32.xlu0 %v1423_v58, %s2014_s12 }
0x23d4   :  { %v1426_v48 = vpop.permute.xlu0 %1425 }
0x23d5   :  { %1855 = vmatmul.mubr.msk.bf16.vlgmr.msra.gmra.mrb[36].mxu0 %vm34_vm0, %v1426_v48 }
0x24a8   :  { %v1464_v50 = vpop.f32.mrb[36].mxu0 }
0x24a9   :  { %v1470_v51 = vadd.f32 %v1464_v50, %v923_v49  ;;  %v1856_v52 = vpop.f32.mrb[37].mxu0 }
0x24aa   :  { %v1467_v53 = vpop.f32.mrb[38].mxu0 }
0x24ab   :  { %1995 = vtanh.f32 %v1470_v51  ;;  %v1857_v54 = vpop.f32.mrb[39].mxu0  ;;  %v1649_v28 = vmul.f32 -1.442695, %v1470_v51 }
0x24ad   :  { %1997 = vpow2.f32 %v1649_v28 }
0x24b5   :  { %v1996_v6 = vpop.eup %1995 }
0x24b6   :  { %1480 = vrot.lane.b32.xlu1 %v1996_v6, %s2013_s10 }
0x24b7   :  { %v1998_v55 = vpop.eup %1997 }
0x24b8   :  { %v1474_v57 = vadd.f32 1.0, %v1998_v55 }
0x24ba   :  { %1999 = vrcp.f32 %v1474_v57 }
0x24c4   :  { %v2000_v63 = vpop.eup %1999 }
0x24c5   :  { %v1478_v4 = vmul.f32 %v2000_v63, %v1410_v43 }
0x2528   :  { %v1481_v0 = vpop.permute.xlu1 %1480 }
0x2529   :  { %v1483_v5 = vmul.f32 %v2000_v63, %v1481_v0 }
0x252b   :  { %1485 = vrot.lane.b32.xlu0 %v1483_v5, %s2013_s10 }
0x259d   :  { %v1486_v7 = vpop.permute.xlu0 %1485 }
0x259e   :  { %v1488_v8 = vadd.f32 %v1486_v7, %v1478_v4 }
0x25a0   :  { %2001 = vtanh.f32 %v1488_v8 }
0x25aa   :  { %v2002_v12 = vpop.eup %2001 }
0x25ab   :  { %1491 = vrot.lane.b32.xlu1 %v2002_v12, %s2013_s10 }
0x261d   :  { %v1492_v13 = vpop.permute.xlu1 %1491 }
0x261e   :  { %v1494_v14 = vmul.f32 %v2000_v63, %v1492_v13 }
0x2620   :  { %v1501_v16 = vpack.c.bf16 %v1494_v14, %v1494_v14 }
0x2622   :  { %1503 = vrot.lane.b32.xlu0 %v1501_v16, %s2014_s12 }
0x2694   :  { %v1504_v10 = vpop.permute.xlu0 %1503 }
0x2695   :  { %1863 = vmatmul.mubr.msk.bf16.vlgmr.msra.gmra.mrb[36].mxu1 %vm34_vm0, %v1504_v10 }
0x2768   :  { %v1542_v19 = vpop.f32.mrb[36].mxu1 }
0x2769   :  { %v1548_v20 = vadd.f32 %v1542_v19, %v926_v2  ;;  %v1864_v22 = vpop.f32.mrb[37].mxu1 }
0x276a   :  { %v1545_v62 = vpop.f32.mrb[38].mxu1 }
0x276b   :  { %2003 = vtanh.f32 %v1548_v20  ;;  %v1865_v23 = vpop.f32.mrb[39].mxu1  ;;  %v1651_v24 = vmul.f32 -1.442695, %v1548_v20 }
0x276d   :  { %2005 = vpow2.f32 %v1651_v24 }
0x2775   :  { %v2004_v21 = vpop.eup %2003 }
0x2776   :  { %1558 = vrot.lane.b32.xlu1 %v2004_v21, %s2013_s10 }
0x2777   :  { %v2006_v25 = vpop.eup %2005 }
0x2778   :  { %v1552_v26 = vadd.f32 1.0, %v2006_v25 }
0x277a   :  { %2007 = vrcp.f32 %v1552_v26 }
0x2784   :  { %v2008_v27 = vpop.eup %2007 }
0x2785   :  { %v1556_v17 = vmul.f32 %v2008_v27, %v1488_v8 }
0x27e8   :  { %v1559_v30 = vpop.permute.xlu1 %1558 }
0x27e9   :  { %v1561_v31 = vmul.f32 %v2008_v27, %v1559_v30 }
0x27eb   :  { %1563 = vrot.lane.b32.xlu0 %v1561_v31, %s2013_s10 }
0x27ef   :  { %812 = vrot.lane.b32.xlu0 %v2348_v11, %s2014_s12 }
0x27f3   :  { %1028 = vrot.lane.b32.xlu0 %v2322_v36, %s2014_s12 }
0x27f7   :  { %1184 = vrot.lane.b32.xlu0 %v2383_v39, %s2014_s12 }
0x27fb   :  { %1340 = vrot.lane.b32.xlu0 %v2416_v29, %s2014_s12 }
0x27ff   :  { %1496 = vrot.lane.b32.xlu0 %v1494_v14, %s2014_s12 }
0x285d   :  { %v1564_v9 = vpop.permute.xlu0 %1563 }
0x285e   :  { %v1566_v32 = vadd.f32 %v1564_v9, %v1556_v17 }
0x2860   :  { %2009 = vtanh.f32 %v1566_v32  ;;  %1580 = vrot.lane.b32.xlu0 %v1566_v32, %s2015_s6 }
0x2861   :  { %v813_v33 = vpop.permute.xlu0 %812 }
0x2862   :  { %815 = vst.msk [vmem:[%s2517_s8] sm:$0xff] %vm34_vm0, %v813_v33 }
0x2865   :  { %v1029_v36 = vpop.permute.xlu0 %1028 }
0x2866   :  { %1031 = vst.msk [vmem:[%s2524_s7] sm:$0xff] %vm34_vm0, %v1029_v36 }
0x2869   :  { %v1185_v11 = vpop.permute.xlu0 %1184 }
0x286a   :  { %v2010_v39 = vpop.eup %2009  ;;  %1187 = vst.msk [vmem:[%s2524_s7 + $0x10] sm:$0xff] %vm34_vm0, %v1185_v11 }
0x286b   :  { %1569 = vrot.lane.b32.xlu1 %v2010_v39, %s2013_s10 }
0x286d   :  { %v1341_v29 = vpop.permute.xlu0 %1340 }
0x286e   :  { %1343 = vst.msk [vmem:[%s2524_s7 + $0x20] sm:$0xff] %vm34_vm0, %v1341_v29 }
0x286f   :  { %817 = vrot.lane.b32.xlu1 %v2333_v42, %s2015_s6 }
0x2871   :  { %v1497_v34 = vpop.permute.xlu0 %1496 }
0x2872   :  { %1499 = vst.msk [vmem:[%s2524_s7 + $0x30] sm:$0xff] %vm34_vm0, %v1497_v34 }
0x2873   :  { %1106 = vrot.lane.b32.xlu1 %v2354_v18, %s2014_s12 }
0x2877   :  { %1262 = vrot.lane.b32.xlu1 %v2400_v60, %s2014_s12 }
0x287b   :  { %1418 = vrot.lane.b32.xlu1 %v2432_v47, %s2014_s12 }
0x28d2   :  { %v1581_v3 = vpop.permute.xlu0 %1580 }
0x28d3   :  { %1653 = vst.msk [vmem:[%s2519_s9 + $0x8] sm:$0xff] %vm34_vm0, %v1581_v3 }
0x28dd   :  { %v1570_v42 = vpop.permute.xlu1 %1569 }
0x28de   :  { %v1572_v35 = vmul.f32 %v2008_v27, %v1570_v42 }
0x28e0   :  { %1574 = vrot.lane.b32.xlu1 %v1572_v35, %s2014_s12 }
0x28e1   :  { %v818_v37 = vpop.permute.xlu1 %817 }
0x28e2   :  { %820 = vst.msk [vmem:[%s2519_s9] sm:$0xff] %vm34_vm0, %v818_v37 }
0x28e5   :  { %v1107_v18 = vpop.permute.xlu1 %1106 }
0x28e6   :  { %1109 = vst.msk [vmem:[%s2524_s7 + $0x8] sm:$0xff] %vm34_vm0, %v1107_v18 }
0x28e9   :  { %v1263_v60 = vpop.permute.xlu1 %1262 }
0x28ea   :  { %1265 = vst.msk [vmem:[%s2524_s7 + $0x18] sm:$0xff] %vm34_vm0, %v1263_v60 }
0x28ed   :  { %v1419_v38 = vpop.permute.xlu1 %1418 }
0x28ee   :  { %1421 = vst.msk [vmem:[%s2524_s7 + $0x28] sm:$0xff] %vm34_vm0, %v1419_v38 }
0x2952   :  { %v1575_v56 = vpop.permute.xlu1 %1574 }
0x2953   :  { %1577 = vst.msk [vmem:[%s2524_s7 + $0x38] sm:$0xff] %vm34_vm0, %v1575_v56  ;;  %1652 = vst.msk [vmem:[%s2517_s8 + $0x8] sm:$0xff] %vm34_vm0, %v1575_v56 }

</bundles_post_ra>
